<compile_context>
chip_gen: v6e
topology: v6e:2x2x1
jax: 0.10.0
libtpu: 0.0.40
codegen_flags: <defaults>
</compile_context>

<pallas_src>
import jax
import jax.numpy as jnp
from jax.experimental import pallas as pl
from jax.experimental.pallas import tpu as pltpu

EMBEDDING_DIM = 128
H1, H2, H3 = 64, 32, 1

# Packed tables above this size are NOT made VMEM-resident (leaves headroom
# under v7x's 64 MiB/TensorCore for weights, scratch and output tiles).
_RESIDENT_TABLE_BUDGET = 40 * (1 << 20)


def _round_up(x, m):
    return ((x + m - 1) // m) * m


def _nbytes(a):
    return a.size * a.dtype.itemsize


def _xavier_uniform(key, shape):
    fan_out, fan_in = shape  # torch Linear weight is (out_features, in_features)
    bound = (6.0 / (fan_in + fan_out)) ** 0.5
    return jax.random.uniform(key, shape, jnp.float32, -bound, bound)


def init_params(num_users, num_items, embedding_dim=EMBEDDING_DIM, seed=42):
    keys = jax.random.split(jax.random.PRNGKey(seed), 8)
    return {
        "user_emb": _xavier_uniform(keys[0], (num_users, embedding_dim)),
        "item_emb": _xavier_uniform(keys[1], (num_items, embedding_dim)),
        "w1": _xavier_uniform(keys[2], (H1, 2 * embedding_dim)),
        "b1": jax.random.uniform(keys[3], (H1,), jnp.float32, -0.05, 0.05),
        "w2": _xavier_uniform(keys[4], (H2, H1)),
        "b2": jax.random.uniform(keys[5], (H2,), jnp.float32, -0.05, 0.05),
        "w3": _xavier_uniform(keys[6], (H3, H2)),
        "b3": jax.random.uniform(keys[7], (H3,), jnp.float32, -0.05, 0.05),
    }


def _pack_table(tab_f32):
    """(rows, D) f32 -> (rows_pad8, D//2) uint32, two bf16 features per word.

    Word c of a row holds feature 2c in bits [0,16) and feature 2c+1 in bits
    [16,32) (built with explicit shifts, so no endianness assumptions).
    """
    rows, d = tab_f32.shape
    rp = _round_up(rows, 8)
    tab = jnp.pad(tab_f32, ((0, rp - rows), (0, 0)))
    bits = jax.lax.bitcast_convert_type(tab.astype(jnp.bfloat16), jnp.uint16)
    bits = bits.astype(jnp.uint32)
    return bits[:, 0::2] | (bits[:, 1::2] << 16)


def prepare_kernel_params(params):
    """One-time hoist of packing / transposes / reshapes / casts off the hot path."""
    D = params["user_emb"].shape[1]
    w1_t = params["w1"].T                      # (2D, 64): rows 0..D-1 user, D..2D-1 item
    wu, wi = w1_t[:D], w1_t[D:]
    # Row permutation matched to the packing (even features in low 16 bits,
    # odd features in high 16 bits; user block then item block).
    w_lo = jnp.concatenate([wu[0::2], wi[0::2]], axis=0).astype(jnp.bfloat16)  # (D, 64)
    w_hi = jnp.concatenate([wu[1::2], wi[1::2]], axis=0).astype(jnp.bfloat16)  # (D, 64)
    return {
        "num_users": int(params["user_emb"].shape[0]),
        "num_items": int(params["item_emb"].shape[0]),
        "user_tab": _pack_table(params["user_emb"]),   # (users_pad8, D//2) u32
        "item_tab": _pack_table(params["item_emb"]),   # (items_pad8, D//2) u32
        "w_lo": w_lo,
        "w_hi": w_hi,
        "b1": params["b1"].reshape(1, H1).astype(jnp.float32),
        "w2_t": params["w2"].T.astype(jnp.bfloat16),   # (64, 32)
        "b2": params["b2"].reshape(1, H2).astype(jnp.float32),
        "w3_row": params["w3"].reshape(1, H2).astype(jnp.float32),  # (1, 32)
        "b3": params["b3"].reshape(1, 1).astype(jnp.float32),
    }


def _mlp_from_packed(p, w_lo_ref, w_hi_ref, b1_ref, w2_ref, b2_ref, w3_ref, b3_ref):
    """p: (tb, D) uint32; cols [0, D/2) = packed user row, [D/2, D) = packed item row."""
    # Unpack 2 x bf16 -> f32 with shifts + same-width bitcasts (layout-safe, VPU only).
    lo = jax.lax.bitcast_convert_type(p << 16, jnp.float32)           # even features
    hi = jax.lax.bitcast_convert_type((p >> 16) << 16, jnp.float32)   # odd features
    # fc1: two K=128 bf16 MXU passes against pre-permuted weight halves
    # (the (tb, 256) concat never exists, weights carry the permutation).
    h1 = (jnp.dot(lo.astype(jnp.bfloat16), w_lo_ref[...],
                  preferred_element_type=jnp.float32)
          + jnp.dot(hi.astype(jnp.bfloat16), w_hi_ref[...],
                    preferred_element_type=jnp.float32)
          + b1_ref[...])
    h1 = jnp.maximum(h1, 0.0)
    h2 = jnp.dot(h1.astype(jnp.bfloat16), w2_ref[...],
                 preferred_element_type=jnp.float32) + b2_ref[...]
    h2 = jnp.maximum(h2, 0.0)
    # fc3 (out_features == 1): VPU multiply + lane reduction, no N=1 MXU pass.
    h3 = jnp.sum(h2 * w3_ref[...], axis=-1, keepdims=True) + b3_ref[...]
    return jax.nn.sigmoid(h3) * 4.0 + 1.0


def _gather_mlp_kernel(u_idx_ref, i_idx_ref,                 # SMEM scalar prefetch
                       user_tab_ref, item_tab_ref,           # VMEM-resident packed tables
                       w_lo_ref, w_hi_ref, b1_ref, w2_ref, b2_ref, w3_ref, b3_ref,
                       out_ref,                               # (tb, 1) f32
                       packed_scr):                           # (tb, D) u32 scratch
    tb = packed_scr.shape[0]
    pw = user_tab_ref.shape[1]                                # D // 2 packed words/row
    base = pl.multiple_of(pl.program_id(0) * tb, tb)

    # Fused embedding gather: indices read from SMEM, dynamic row loads from the
    # VMEM-resident packed tables into ONE combined scratch (user | item halves).
    def gather_row(r, carry):
        b = base + r
        packed_scr[r, 0:pw] = user_tab_ref[u_idx_ref[b], :]
        packed_scr[r, pw:2 * pw] = item_tab_ref[i_idx_ref[b], :]
        return carry

    jax.lax.fori_loop(0, tb, gather_row, 0, unroll=8)

    out_ref[...] = _mlp_from_packed(packed_scr[...], w_lo_ref, w_hi_ref,
                                    b1_ref, w2_ref, b2_ref, w3_ref, b3_ref)


def _mlp_only_kernel(packed_ref, w_lo_ref, w_hi_ref, b1_ref, w2_ref, b2_ref,
                     w3_ref, b3_ref, out_ref):
    """Large-table fallback: features were gathered from HBM outside the kernel."""
    out_ref[...] = _mlp_from_packed(packed_ref[...], w_lo_ref, w_hi_ref,
                                    b1_ref, w2_ref, b2_ref, w3_ref, b3_ref)


def net_forward(kparams, x_idx, *, tile_b=1024, resident_tables=None):
    """x_idx: int array (B, 2) of [user_idx, item_idx]. Returns (B, 1) f32 in [1, 5]."""
    B = x_idx.shape[0]
    user_tab, item_tab = kparams["user_tab"], kparams["item_tab"]
    pw = user_tab.shape[1]                                    # D // 2
    weights = tuple(kparams[k] for k in
                    ("w_lo", "w_hi", "b1", "w2_t", "b2", "w3_row", "b3"))

    tb = _round_up(min(tile_b, _round_up(B, 8)), 8)
    b_pad = _round_up(B, tb)
    n_tiles = b_pad // tb

    # Cheap OOB guard: an out-of-range index would otherwise read garbage VMEM
    # silently (same contract as nn.Embedding, but clipping costs ~nothing).
    u_idx = jnp.clip(x_idx[:, 0].astype(jnp.int32), 0, kparams["num_users"] - 1)
    i_idx = jnp.clip(x_idx[:, 1].astype(jnp.int32), 0, kparams["num_items"] - 1)
    u_idx = jnp.pad(u_idx, (0, b_pad - B))
    i_idx = jnp.pad(i_idx, (0, b_pad - B))

    table_bytes = _nbytes(user_tab) + _nbytes(item_tab)
    weight_bytes = sum(_nbytes(w) for w in weights)
    scratch_bytes = tb * 2 * pw * 4
    out_tile_bytes = tb * 128 * 4              # (tb, 1) f32 tile, lane-padded

    if resident_tables is None:
        resident_tables = table_bytes <= _RESIDENT_TABLE_BUDGET

    cost = pl.CostEstimate(
        flops=2 * b_pad * (2 * EMBEDDING_DIM * H1 + H1 * H2 + H2),
        transcendentals=b_pad,                 # sigmoid
        bytes_accessed=int(b_pad * (2 * pw * 4 + 8 + 4) + table_bytes + weight_bytes),
    )

    if resident_tables:
        def run(single_buffer):
            def resident(arr):
                if single_buffer:
                    # Constant index_map + 1 buffer: DMA'd once, never re-fetched,
                    # no wasted second copy of the largest VMEM consumers.
                    return pl.BlockSpec(arr.shape, lambda i, *_: (0, 0),
                                        pipeline_mode=pl.Buffered(buffer_count=1))
                return pl.BlockSpec(arr.shape, lambda i, *_: (0, 0))

            bufs = 1 if single_buffer else 2
            needed = (bufs * (table_bytes + weight_bytes) + scratch_bytes
                      + 2 * out_tile_bytes + (4 << 20))
            vmem_limit = int(min(max(needed, 32 << 20), 64 << 20))

            grid_spec = pltpu.PrefetchScalarGridSpec(
                num_scalar_prefetch=2,          # u_idx, i_idx -> SMEM
                grid=(n_tiles,),
                in_specs=[resident(user_tab), resident(item_tab)]
                         + [resident(w) for w in weights],
                out_specs=pl.BlockSpec((tb, H3), lambda i, *_: (i, 0)),
                scratch_shapes=[pltpu.VMEM((tb, 2 * pw), jnp.uint32)],
            )
            return pl.pallas_call(
                _gather_mlp_kernel,
                out_shape=jax.ShapeDtypeStruct((b_pad, H3), jnp.float32),
                grid_spec=grid_spec,
                compiler_params=pltpu.CompilerParams(
                    dimension_semantics=("parallel",),
                    vmem_limit_bytes=vmem_limit,
                ),
                cost_estimate=cost,
            )(u_idx, i_idx, user_tab, item_tab, *weights)

        try:
            out = run(single_buffer=True)
        except Exception:
            # This jax/Mosaic version rejected single-buffered pipeline_mode:
            # fall back to default double-buffering (correct, just 2x table VMEM).
            out = run(single_buffer=False)
    else:
        # Tables too large to sit in VMEM (e.g. full MovieLens vocab on v7x's
        # 64 MiB/TC): gather packed rows from HBM with XLA and fuse only the MLP.
        # TODO(synk): a fully fused variant would keep the tables in HBM
        # (memory_space=pl.ANY) and DMA-gather rows per tile with
        # pltpu.make_async_copy into double-buffered VMEM scratch.
        feats = jnp.concatenate(
            [jnp.take(user_tab, u_idx, axis=0), jnp.take(item_tab, i_idx, axis=0)],
            axis=1)                                           # (b_pad, D) uint32
        needed = (2 * (scratch_bytes + out_tile_bytes) + 2 * weight_bytes + (4 << 20))
        vmem_limit = int(min(max(needed, 32 << 20), 64 << 20))
        out = pl.pallas_call(
            _mlp_only_kernel,
            out_shape=jax.ShapeDtypeStruct((b_pad, H3), jnp.float32),
            grid=(n_tiles,),
            in_specs=[pl.BlockSpec((tb, 2 * pw), lambda i: (i, 0))]
                     + [pl.BlockSpec(w.shape, lambda i: (0, 0)) for w in weights],
            out_specs=pl.BlockSpec((tb, H3), lambda i: (i, 0)),
            compiler_params=pltpu.CompilerParams(
                dimension_semantics=("parallel",),
                vmem_limit_bytes=vmem_limit,
            ),
            cost_estimate=cost,
        )(feats, *weights)

    return out[:B]


def net_forward_ref(params, x_idx):
    """Pure-JAX f32 reference (mirrors the PyTorch forward)."""
    user_e = jnp.take(params["user_emb"], x_idx[:, 0], axis=0)
    item_e = jnp.take(params["item_emb"], x_idx[:, 1], axis=0)
    h = jnp.concatenate([user_e, item_e], axis=1)
    h = jnp.maximum(h @ params["w1"].T + params["b1"], 0.0)
    h = jnp.maximum(h @ params["w2"].T + params["b2"], 0.0)
    return jax.nn.sigmoid(h @ params["w3"].T + params["b3"]) * 4.0 + 1.0


if __name__ == "__main__":
    num_users, num_items, batch = 10, 20, 8

    params = init_params(num_users, num_items)
    kparams = prepare_kernel_params(params)        # packing / transposes hoisted, once

    key = jax.random.PRNGKey(0)
    ku, ki = jax.random.split(key)
    user_idx = jax.random.randint(ku, (batch,), 0, num_users, dtype=jnp.int32)
    item_idx = jax.random.randint(ki, (batch,), 0, num_items, dtype=jnp.int32)
    x = jnp.stack([user_idx, item_idx], axis=1)     # (B, 2) int32

    ref = net_forward_ref(params, x)

    # Main path: VMEM-resident packed tables, fused gather + MLP.
    out = jax.block_until_ready(net_forward(kparams, x))
    assert out.shape == (batch, 1), out.shape
    # bf16 embeddings / bf16 MXU matmuls with f32 accumulation vs f32 reference
    # on a (1, 5)-range output -> loose tolerance.
    assert jnp.allclose(out, ref, atol=5e-2), (out, ref)
    assert bool(jnp.all((out >= 1.0) & (out <= 5.0)))

    # Large-table fallback path (forced): XLA HBM gather + MLP-only kernel.
    out2 = jax.block_until_ready(net_forward(kparams, x, resident_tables=False))
    assert jnp.allclose(out2, ref, atol=5e-2), (out2, ref)

    print("KERNEL_OK")
</pallas_src>

<mosaic_0001>
module attributes {stable_mosaic.version = 11 : i64} {
  func.func @_gather_mlp_kernel(%arg0: i32, %arg1: memref<8xi32, #tpu.memory_space<smem>>, %arg2: memref<8xi32, #tpu.memory_space<smem>>, %arg3: memref<16x64xi32, #tpu.memory_space<vmem>>, %arg4: memref<24x64xi32, #tpu.memory_space<vmem>>, %arg5: memref<128x64xbf16, #tpu.memory_space<vmem>>, %arg6: memref<128x64xbf16, #tpu.memory_space<vmem>>, %arg7: memref<1x64xf32, #tpu.memory_space<vmem>>, %arg8: memref<64x32xbf16, #tpu.memory_space<vmem>>, %arg9: memref<1x32xf32, #tpu.memory_space<vmem>>, %arg10: memref<1x32xf32, #tpu.memory_space<vmem>>, %arg11: memref<1x1xf32, #tpu.memory_space<vmem>>, %arg12: memref<8x1xf32, #tpu.memory_space<vmem>>, %arg13: memref<8x128xi32, #tpu.memory_space<vmem>>) attributes {dimension_semantics = [#tpu.dimension_semantics<parallel>], iteration_bounds = array<i64: 1>, scalar_prefetch = 2 : i64, scratch_operands = 1 : i64, tpu.core_type = #tpu.core_type<tc>, window_params = [{pipeline_mode = #tpu.pipeline_mode<synchronous>, transform_indices = @transform_0, window_bounds = array<i64: 16, 64>}, {pipeline_mode = #tpu.pipeline_mode<synchronous>, transform_indices = @transform_1, window_bounds = array<i64: 24, 64>}, {pipeline_mode = #tpu.pipeline_mode<synchronous>, transform_indices = @transform_2, window_bounds = array<i64: 128, 64>}, {pipeline_mode = #tpu.pipeline_mode<synchronous>, transform_indices = @transform_3, window_bounds = array<i64: 128, 64>}, {pipeline_mode = #tpu.pipeline_mode<synchronous>, transform_indices = @transform_4, window_bounds = array<i64: 1, 64>}, {pipeline_mode = #tpu.pipeline_mode<synchronous>, transform_indices = @transform_5, window_bounds = array<i64: 64, 32>}, {pipeline_mode = #tpu.pipeline_mode<synchronous>, transform_indices = @transform_6, window_bounds = array<i64: 1, 32>}, {pipeline_mode = #tpu.pipeline_mode<synchronous>, transform_indices = @transform_7, window_bounds = array<i64: 1, 32>}, {pipeline_mode = #tpu.pipeline_mode<synchronous>, transform_indices = @transform_8, window_bounds = array<i64: 1, 1>}, {transform_indices = @transform_9, window_bounds = array<i64: 8, 1>}]} {
    %c8_i32 = arith.constant 8 : i32
    %0 = arith.muli %arg0, %c8_i32 : i32
    %1 = tpu.assume_multiple %0, 8 : i32
    %c0_i32 = arith.constant 0 : i32
    %2 = arith.addi %1, %c0_i32 : i32
    %3 = arith.index_cast %2 : i32 to index
    %4 = memref.load %arg1[%3] : memref<8xi32, #tpu.memory_space<smem>>
    %5 = arith.index_cast %4 : i32 to index
    %c0 = arith.constant 0 : index
    %6 = vector.load %arg3[%5, %c0] : memref<16x64xi32, #tpu.memory_space<vmem>>, vector<1x64xi32>
    %7 = vector.shape_cast %6 : vector<1x64xi32> to vector<64xi32>
    %8 = arith.index_cast %c0_i32 : i32 to index
    %c0_0 = arith.constant 0 : index
    %9 = vector.load %arg13[%8, %c0_0] : memref<8x128xi32, #tpu.memory_space<vmem>>, vector<1x64xi32>
    %10 = vector.shape_cast %9 : vector<1x64xi32> to vector<64xi32>
    %11 = vector.shape_cast %7 : vector<64xi32> to vector<1x64xi32>
    tpu.vector_store %arg13[%8, %c0_0], %11 {strides = array<i32>} : memref<8x128xi32, #tpu.memory_space<vmem>>, vector<1x64xi32>,
    %12 = arith.index_cast %2 : i32 to index
    %13 = memref.load %arg2[%12] : memref<8xi32, #tpu.memory_space<smem>>
    %14 = arith.index_cast %13 : i32 to index
    %c0_1 = arith.constant 0 : index
    %15 = vector.load %arg4[%14, %c0_1] : memref<24x64xi32, #tpu.memory_space<vmem>>, vector<1x64xi32>
    %16 = vector.shape_cast %15 : vector<1x64xi32> to vector<64xi32>
    %17 = arith.index_cast %c0_i32 : i32 to index
    %c64 = arith.constant 64 : index
    %18 = vector.load %arg13[%17, %c64] : memref<8x128xi32, #tpu.memory_space<vmem>>, vector<1x64xi32>
    %19 = vector.shape_cast %18 : vector<1x64xi32> to vector<64xi32>
    %20 = vector.shape_cast %16 : vector<64xi32> to vector<1x64xi32>
    tpu.vector_store %arg13[%17, %c64], %20 {strides = array<i32>} : memref<8x128xi32, #tpu.memory_space<vmem>>, vector<1x64xi32>,
    %c1_i32 = arith.constant 1 : i32
    %21 = arith.addi %1, %c1_i32 : i32
    %22 = arith.index_cast %21 : i32 to index
    %23 = memref.load %arg1[%22] : memref<8xi32, #tpu.memory_space<smem>>
    %24 = arith.index_cast %23 : i32 to index
    %c0_2 = arith.constant 0 : index
    %25 = vector.load %arg3[%24, %c0_2] : memref<16x64xi32, #tpu.memory_space<vmem>>, vector<1x64xi32>
    %26 = vector.shape_cast %25 : vector<1x64xi32> to vector<64xi32>
    %27 = arith.index_cast %c1_i32 : i32 to index
    %c0_3 = arith.constant 0 : index
    %28 = vector.load %arg13[%27, %c0_3] : memref<8x128xi32, #tpu.memory_space<vmem>>, vector<1x64xi32>
    %29 = vector.shape_cast %28 : vector<1x64xi32> to vector<64xi32>
    %30 = vector.shape_cast %26 : vector<64xi32> to vector<1x64xi32>
    tpu.vector_store %arg13[%27, %c0_3], %30 {strides = array<i32>} : memref<8x128xi32, #tpu.memory_space<vmem>>, vector<1x64xi32>,
    %31 = arith.index_cast %21 : i32 to index
    %32 = memref.load %arg2[%31] : memref<8xi32, #tpu.memory_space<smem>>
    %33 = arith.index_cast %32 : i32 to index
    %c0_4 = arith.constant 0 : index
    %34 = vector.load %arg4[%33, %c0_4] : memref<24x64xi32, #tpu.memory_space<vmem>>, vector<1x64xi32>
    %35 = vector.shape_cast %34 : vector<1x64xi32> to vector<64xi32>
    %36 = arith.index_cast %c1_i32 : i32 to index
    %c64_5 = arith.constant 64 : index
    %37 = vector.load %arg13[%36, %c64_5] : memref<8x128xi32, #tpu.memory_space<vmem>>, vector<1x64xi32>
    %38 = vector.shape_cast %37 : vector<1x64xi32> to vector<64xi32>
    %39 = vector.shape_cast %35 : vector<64xi32> to vector<1x64xi32>
    tpu.vector_store %arg13[%36, %c64_5], %39 {strides = array<i32>} : memref<8x128xi32, #tpu.memory_space<vmem>>, vector<1x64xi32>,
    %c2_i32 = arith.constant 2 : i32
    %40 = arith.addi %1, %c2_i32 : i32
    %41 = arith.index_cast %40 : i32 to index
    %42 = memref.load %arg1[%41] : memref<8xi32, #tpu.memory_space<smem>>
    %43 = arith.index_cast %42 : i32 to index
    %c0_6 = arith.constant 0 : index
    %44 = vector.load %arg3[%43, %c0_6] : memref<16x64xi32, #tpu.memory_space<vmem>>, vector<1x64xi32>
    %45 = vector.shape_cast %44 : vector<1x64xi32> to vector<64xi32>
    %46 = arith.index_cast %c2_i32 : i32 to index
    %c0_7 = arith.constant 0 : index
    %47 = vector.load %arg13[%46, %c0_7] : memref<8x128xi32, #tpu.memory_space<vmem>>, vector<1x64xi32>
    %48 = vector.shape_cast %47 : vector<1x64xi32> to vector<64xi32>
    %49 = vector.shape_cast %45 : vector<64xi32> to vector<1x64xi32>
    tpu.vector_store %arg13[%46, %c0_7], %49 {strides = array<i32>} : memref<8x128xi32, #tpu.memory_space<vmem>>, vector<1x64xi32>,
    %50 = arith.index_cast %40 : i32 to index
    %51 = memref.load %arg2[%50] : memref<8xi32, #tpu.memory_space<smem>>
    %52 = arith.index_cast %51 : i32 to index
    %c0_8 = arith.constant 0 : index
    %53 = vector.load %arg4[%52, %c0_8] : memref<24x64xi32, #tpu.memory_space<vmem>>, vector<1x64xi32>
    %54 = vector.shape_cast %53 : vector<1x64xi32> to vector<64xi32>
    %55 = arith.index_cast %c2_i32 : i32 to index
    %c64_9 = arith.constant 64 : index
    %56 = vector.load %arg13[%55, %c64_9] : memref<8x128xi32, #tpu.memory_space<vmem>>, vector<1x64xi32>
    %57 = vector.shape_cast %56 : vector<1x64xi32> to vector<64xi32>
    %58 = vector.shape_cast %54 : vector<64xi32> to vector<1x64xi32>
    tpu.vector_store %arg13[%55, %c64_9], %58 {strides = array<i32>} : memref<8x128xi32, #tpu.memory_space<vmem>>, vector<1x64xi32>,
    %c3_i32 = arith.constant 3 : i32
    %59 = arith.addi %1, %c3_i32 : i32
    %60 = arith.index_cast %59 : i32 to index
    %61 = memref.load %arg1[%60] : memref<8xi32, #tpu.memory_space<smem>>
    %62 = arith.index_cast %61 : i32 to index
    %c0_10 = arith.constant 0 : index
    %63 = vector.load %arg3[%62, %c0_10] : memref<16x64xi32, #tpu.memory_space<vmem>>, vector<1x64xi32>
    %64 = vector.shape_cast %63 : vector<1x64xi32> to vector<64xi32>
    %65 = arith.index_cast %c3_i32 : i32 to index
    %c0_11 = arith.constant 0 : index
    %66 = vector.load %arg13[%65, %c0_11] : memref<8x128xi32, #tpu.memory_space<vmem>>, vector<1x64xi32>
    %67 = vector.shape_cast %66 : vector<1x64xi32> to vector<64xi32>
    %68 = vector.shape_cast %64 : vector<64xi32> to vector<1x64xi32>
    tpu.vector_store %arg13[%65, %c0_11], %68 {strides = array<i32>} : memref<8x128xi32, #tpu.memory_space<vmem>>, vector<1x64xi32>,
    %69 = arith.index_cast %59 : i32 to index
    %70 = memref.load %arg2[%69] : memref<8xi32, #tpu.memory_space<smem>>
    %71 = arith.index_cast %70 : i32 to index
    %c0_12 = arith.constant 0 : index
    %72 = vector.load %arg4[%71, %c0_12] : memref<24x64xi32, #tpu.memory_space<vmem>>, vector<1x64xi32>
    %73 = vector.shape_cast %72 : vector<1x64xi32> to vector<64xi32>
    %74 = arith.index_cast %c3_i32 : i32 to index
    %c64_13 = arith.constant 64 : index
    %75 = vector.load %arg13[%74, %c64_13] : memref<8x128xi32, #tpu.memory_space<vmem>>, vector<1x64xi32>
    %76 = vector.shape_cast %75 : vector<1x64xi32> to vector<64xi32>
    %77 = vector.shape_cast %73 : vector<64xi32> to vector<1x64xi32>
    tpu.vector_store %arg13[%74, %c64_13], %77 {strides = array<i32>} : memref<8x128xi32, #tpu.memory_space<vmem>>, vector<1x64xi32>,
    %c4_i32 = arith.constant 4 : i32
    %78 = arith.addi %1, %c4_i32 : i32
    %79 = arith.index_cast %78 : i32 to index
    %80 = memref.load %arg1[%79] : memref<8xi32, #tpu.memory_space<smem>>
    %81 = arith.index_cast %80 : i32 to index
    %c0_14 = arith.constant 0 : index
    %82 = vector.load %arg3[%81, %c0_14] : memref<16x64xi32, #tpu.memory_space<vmem>>, vector<1x64xi32>
    %83 = vector.shape_cast %82 : vector<1x64xi32> to vector<64xi32>
    %84 = arith.index_cast %c4_i32 : i32 to index
    %c0_15 = arith.constant 0 : index
    %85 = vector.load %arg13[%84, %c0_15] : memref<8x128xi32, #tpu.memory_space<vmem>>, vector<1x64xi32>
    %86 = vector.shape_cast %85 : vector<1x64xi32> to vector<64xi32>
    %87 = vector.shape_cast %83 : vector<64xi32> to vector<1x64xi32>
    tpu.vector_store %arg13[%84, %c0_15], %87 {strides = array<i32>} : memref<8x128xi32, #tpu.memory_space<vmem>>, vector<1x64xi32>,
    %88 = arith.index_cast %78 : i32 to index
    %89 = memref.load %arg2[%88] : memref<8xi32, #tpu.memory_space<smem>>
    %90 = arith.index_cast %89 : i32 to index
    %c0_16 = arith.constant 0 : index
    %91 = vector.load %arg4[%90, %c0_16] : memref<24x64xi32, #tpu.memory_space<vmem>>, vector<1x64xi32>
    %92 = vector.shape_cast %91 : vector<1x64xi32> to vector<64xi32>
    %93 = arith.index_cast %c4_i32 : i32 to index
    %c64_17 = arith.constant 64 : index
    %94 = vector.load %arg13[%93, %c64_17] : memref<8x128xi32, #tpu.memory_space<vmem>>, vector<1x64xi32>
    %95 = vector.shape_cast %94 : vector<1x64xi32> to vector<64xi32>
    %96 = vector.shape_cast %92 : vector<64xi32> to vector<1x64xi32>
    tpu.vector_store %arg13[%93, %c64_17], %96 {strides = array<i32>} : memref<8x128xi32, #tpu.memory_space<vmem>>, vector<1x64xi32>,
    %c5_i32 = arith.constant 5 : i32
    %97 = arith.addi %1, %c5_i32 : i32
    %98 = arith.index_cast %97 : i32 to index
    %99 = memref.load %arg1[%98] : memref<8xi32, #tpu.memory_space<smem>>
    %100 = arith.index_cast %99 : i32 to index
    %c0_18 = arith.constant 0 : index
    %101 = vector.load %arg3[%100, %c0_18] : memref<16x64xi32, #tpu.memory_space<vmem>>, vector<1x64xi32>
    %102 = vector.shape_cast %101 : vector<1x64xi32> to vector<64xi32>
    %103 = arith.index_cast %c5_i32 : i32 to index
    %c0_19 = arith.constant 0 : index
    %104 = vector.load %arg13[%103, %c0_19] : memref<8x128xi32, #tpu.memory_space<vmem>>, vector<1x64xi32>
    %105 = vector.shape_cast %104 : vector<1x64xi32> to vector<64xi32>
    %106 = vector.shape_cast %102 : vector<64xi32> to vector<1x64xi32>
    tpu.vector_store %arg13[%103, %c0_19], %106 {strides = array<i32>} : memref<8x128xi32, #tpu.memory_space<vmem>>, vector<1x64xi32>,
    %107 = arith.index_cast %97 : i32 to index
    %108 = memref.load %arg2[%107] : memref<8xi32, #tpu.memory_space<smem>>
    %109 = arith.index_cast %108 : i32 to index
    %c0_20 = arith.constant 0 : index
    %110 = vector.load %arg4[%109, %c0_20] : memref<24x64xi32, #tpu.memory_space<vmem>>, vector<1x64xi32>
    %111 = vector.shape_cast %110 : vector<1x64xi32> to vector<64xi32>
    %112 = arith.index_cast %c5_i32 : i32 to index
    %c64_21 = arith.constant 64 : index
    %113 = vector.load %arg13[%112, %c64_21] : memref<8x128xi32, #tpu.memory_space<vmem>>, vector<1x64xi32>
    %114 = vector.shape_cast %113 : vector<1x64xi32> to vector<64xi32>
    %115 = vector.shape_cast %111 : vector<64xi32> to vector<1x64xi32>
    tpu.vector_store %arg13[%112, %c64_21], %115 {strides = array<i32>} : memref<8x128xi32, #tpu.memory_space<vmem>>, vector<1x64xi32>,
    %c6_i32 = arith.constant 6 : i32
    %116 = arith.addi %1, %c6_i32 : i32
    %117 = arith.index_cast %116 : i32 to index
    %118 = memref.load %arg1[%117] : memref<8xi32, #tpu.memory_space<smem>>
    %119 = arith.index_cast %118 : i32 to index
    %c0_22 = arith.constant 0 : index
    %120 = vector.load %arg3[%119, %c0_22] : memref<16x64xi32, #tpu.memory_space<vmem>>, vector<1x64xi32>
    %121 = vector.shape_cast %120 : vector<1x64xi32> to vector<64xi32>
    %122 = arith.index_cast %c6_i32 : i32 to index
    %c0_23 = arith.constant 0 : index
    %123 = vector.load %arg13[%122, %c0_23] : memref<8x128xi32, #tpu.memory_space<vmem>>, vector<1x64xi32>
    %124 = vector.shape_cast %123 : vector<1x64xi32> to vector<64xi32>
    %125 = vector.shape_cast %121 : vector<64xi32> to vector<1x64xi32>
    tpu.vector_store %arg13[%122, %c0_23], %125 {strides = array<i32>} : memref<8x128xi32, #tpu.memory_space<vmem>>, vector<1x64xi32>,
    %126 = arith.index_cast %116 : i32 to index
    %127 = memref.load %arg2[%126] : memref<8xi32, #tpu.memory_space<smem>>
    %128 = arith.index_cast %127 : i32 to index
    %c0_24 = arith.constant 0 : index
    %129 = vector.load %arg4[%128, %c0_24] : memref<24x64xi32, #tpu.memory_space<vmem>>, vector<1x64xi32>
    %130 = vector.shape_cast %129 : vector<1x64xi32> to vector<64xi32>
    %131 = arith.index_cast %c6_i32 : i32 to index
    %c64_25 = arith.constant 64 : index
    %132 = vector.load %arg13[%131, %c64_25] : memref<8x128xi32, #tpu.memory_space<vmem>>, vector<1x64xi32>
    %133 = vector.shape_cast %132 : vector<1x64xi32> to vector<64xi32>
    %134 = vector.shape_cast %130 : vector<64xi32> to vector<1x64xi32>
    tpu.vector_store %arg13[%131, %c64_25], %134 {strides = array<i32>} : memref<8x128xi32, #tpu.memory_space<vmem>>, vector<1x64xi32>,
    %c7_i32 = arith.constant 7 : i32
    %135 = arith.addi %1, %c7_i32 : i32
    %136 = arith.index_cast %135 : i32 to index
    %137 = memref.load %arg1[%136] : memref<8xi32, #tpu.memory_space<smem>>
    %138 = arith.index_cast %137 : i32 to index
    %c0_26 = arith.constant 0 : index
    %139 = vector.load %arg3[%138, %c0_26] : memref<16x64xi32, #tpu.memory_space<vmem>>, vector<1x64xi32>
    %140 = vector.shape_cast %139 : vector<1x64xi32> to vector<64xi32>
    %141 = arith.index_cast %c7_i32 : i32 to index
    %c0_27 = arith.constant 0 : index
    %142 = vector.load %arg13[%141, %c0_27] : memref<8x128xi32, #tpu.memory_space<vmem>>, vector<1x64xi32>
    %143 = vector.shape_cast %142 : vector<1x64xi32> to vector<64xi32>
    %144 = vector.shape_cast %140 : vector<64xi32> to vector<1x64xi32>
    tpu.vector_store %arg13[%141, %c0_27], %144 {strides = array<i32>} : memref<8x128xi32, #tpu.memory_space<vmem>>, vector<1x64xi32>,
    %145 = arith.index_cast %135 : i32 to index
    %146 = memref.load %arg2[%145] : memref<8xi32, #tpu.memory_space<smem>>
    %147 = arith.index_cast %146 : i32 to index
    %c0_28 = arith.constant 0 : index
    %148 = vector.load %arg4[%147, %c0_28] : memref<24x64xi32, #tpu.memory_space<vmem>>, vector<1x64xi32>
    %149 = vector.shape_cast %148 : vector<1x64xi32> to vector<64xi32>
    %150 = arith.index_cast %c7_i32 : i32 to index
    %c64_29 = arith.constant 64 : index
    %151 = vector.load %arg13[%150, %c64_29] : memref<8x128xi32, #tpu.memory_space<vmem>>, vector<1x64xi32>
    %152 = vector.shape_cast %151 : vector<1x64xi32> to vector<64xi32>
    %153 = vector.shape_cast %149 : vector<64xi32> to vector<1x64xi32>
    tpu.vector_store %arg13[%150, %c64_29], %153 {strides = array<i32>} : memref<8x128xi32, #tpu.memory_space<vmem>>, vector<1x64xi32>,
    %c8_i32_30 = arith.constant 8 : i32
    %c0_31 = arith.constant 0 : index
    %c0_32 = arith.constant 0 : index
    %154 = vector.load %arg13[%c0_31, %c0_32] : memref<8x128xi32, #tpu.memory_space<vmem>>, vector<8x128xi32>
    %c16_i32 = arith.constant 16 : i32
    %155 = vector.broadcast %c16_i32 : i32 to vector<8x128xi32>
    %156 = arith.shli %154, %155 : vector<8x128xi32>
    %157 = tpu.bitcast %156 : vector<8x128xi32> -> vector<8x128xf32>
    %c16_i32_33 = arith.constant 16 : i32
    %158 = vector.broadcast %c16_i32_33 : i32 to vector<8x128xi32>
    %159 = arith.shrui %154, %158 : vector<8x128xi32>
    %c16_i32_34 = arith.constant 16 : i32
    %160 = vector.broadcast %c16_i32_34 : i32 to vector<8x128xi32>
    %161 = arith.shli %159, %160 : vector<8x128xi32>
    %162 = tpu.bitcast %161 : vector<8x128xi32> -> vector<8x128xf32>
    %163 = arith.truncf %157 : vector<8x128xf32> to vector<8x128xbf16>
    %c0_35 = arith.constant 0 : index
    %c0_36 = arith.constant 0 : index
    %164 = vector.load %arg5[%c0_35, %c0_36] : memref<128x64xbf16, #tpu.memory_space<vmem>>, vector<128x64xbf16>
    %cst = arith.constant dense<0.000000e+00> : vector<8x64xf32>
    %165 = tpu.matmul %163, %164, %cst {dimension_numbers = #tpu.dot_dimension_numbers<[1], [0], [0], [1], [0, 0, 1, 1], [], []>} : vector<8x128xbf16>, vector<128x64xbf16>, vector<8x64xf32> -> vector<8x64xf32>
    %166 = arith.truncf %162 : vector<8x128xf32> to vector<8x128xbf16>
    %c0_37 = arith.constant 0 : index
    %c0_38 = arith.constant 0 : index
    %167 = vector.load %arg6[%c0_37, %c0_38] : memref<128x64xbf16, #tpu.memory_space<vmem>>, vector<128x64xbf16>
    %cst_39 = arith.constant dense<0.000000e+00> : vector<8x64xf32>
    %168 = tpu.matmul %166, %167, %cst_39 {dimension_numbers = #tpu.dot_dimension_numbers<[1], [0], [0], [1], [0, 0, 1, 1], [], []>} : vector<8x128xbf16>, vector<128x64xbf16>, vector<8x64xf32> -> vector<8x64xf32>
    %169 = arith.addf %165, %168 : vector<8x64xf32>
    %c0_40 = arith.constant 0 : index
    %c0_41 = arith.constant 0 : index
    %170 = vector.load %arg7[%c0_40, %c0_41] : memref<1x64xf32, #tpu.memory_space<vmem>>, vector<1x64xf32>
    %171 = vector.broadcast %170 : vector<1x64xf32> to vector<8x64xf32>
    %172 = arith.addf %169, %171 : vector<8x64xf32>
    %cst_42 = arith.constant 0.000000e+00 : f32
    %173 = vector.broadcast %cst_42 : f32 to vector<8x64xf32>
    %174 = arith.maximumf %172, %173 : vector<8x64xf32>
    %175 = arith.truncf %174 : vector<8x64xf32> to vector<8x64xbf16>
    %c0_43 = arith.constant 0 : index
    %c0_44 = arith.constant 0 : index
    %176 = vector.load %arg8[%c0_43, %c0_44] : memref<64x32xbf16, #tpu.memory_space<vmem>>, vector<64x32xbf16>
    %cst_45 = arith.constant dense<0.000000e+00> : vector<8x32xf32>
    %177 = tpu.matmul %175, %176, %cst_45 {dimension_numbers = #tpu.dot_dimension_numbers<[1], [0], [0], [1], [0, 0, 1, 1], [], []>} : vector<8x64xbf16>, vector<64x32xbf16>, vector<8x32xf32> -> vector<8x32xf32>
    %c0_46 = arith.constant 0 : index
    %c0_47 = arith.constant 0 : index
    %178 = vector.load %arg9[%c0_46, %c0_47] : memref<1x32xf32, #tpu.memory_space<vmem>>, vector<1x32xf32>
    %179 = vector.broadcast %178 : vector<1x32xf32> to vector<8x32xf32>
    %180 = arith.addf %177, %179 : vector<8x32xf32>
    %cst_48 = arith.constant 0.000000e+00 : f32
    %181 = vector.broadcast %cst_48 : f32 to vector<8x32xf32>
    %182 = arith.maximumf %180, %181 : vector<8x32xf32>
    %c0_49 = arith.constant 0 : index
    %c0_50 = arith.constant 0 : index
    %183 = vector.load %arg10[%c0_49, %c0_50] : memref<1x32xf32, #tpu.memory_space<vmem>>, vector<1x32xf32>
    %184 = vector.broadcast %183 : vector<1x32xf32> to vector<8x32xf32>
    %185 = arith.mulf %182, %184 : vector<8x32xf32>
    %cst_51 = arith.constant dense<0.000000e+00> : vector<8xf32>
    %186 = vector.multi_reduction <add>, %185, %cst_51 [1] : vector<8x32xf32> to vector<8xf32>
    %187 = vector.shape_cast %186 : vector<8xf32> to vector<8x1xf32>
    %c0_52 = arith.constant 0 : index
    %c0_53 = arith.constant 0 : index
    %188 = vector.load %arg11[%c0_52, %c0_53] : memref<1x1xf32, #tpu.memory_space<vmem>>, vector<1x1xf32>
    %189 = vector.broadcast %188 : vector<1x1xf32> to vector<8x1xf32>
    %190 = arith.addf %187, %189 : vector<8x1xf32>
    %191 = arith.negf %190 : vector<8x1xf32>
    %192 = math.exp %191 : vector<8x1xf32>
    %cst_54 = arith.constant 1.000000e+00 : f32
    %193 = vector.broadcast %cst_54 : f32 to vector<8x1xf32>
    %194 = arith.addf %193, %192 : vector<8x1xf32>
    %195 = arith.divf %193, %194 : vector<8x1xf32>
    %cst_55 = arith.constant 4.000000e+00 : f32
    %196 = vector.broadcast %cst_55 : f32 to vector<8x1xf32>
    %197 = arith.mulf %195, %196 : vector<8x1xf32>
    %cst_56 = arith.constant 1.000000e+00 : f32
    %198 = vector.broadcast %cst_56 : f32 to vector<8x1xf32>
    %199 = arith.addf %197, %198 : vector<8x1xf32>
    %c0_57 = arith.constant 0 : index
    %c0_58 = arith.constant 0 : index
    %200 = vector.load %arg12[%c0_57, %c0_58] : memref<8x1xf32, #tpu.memory_space<vmem>>, vector<8x1xf32>
    tpu.vector_store %arg12[%c0_57, %c0_58], %199 {strides = array<i32>} : memref<8x1xf32, #tpu.memory_space<vmem>>, vector<8x1xf32>,
    return
  }
  func.func @transform_0(%arg0: i32, %arg1: memref<8xi32, #tpu.memory_space<smem>>, %arg2: memref<8xi32, #tpu.memory_space<smem>>) -> (i32, i32) {
    %c0_i32 = arith.constant 0 : i32
    %c0_i32_0 = arith.constant 0 : i32
    %c0_i32_1 = arith.constant 0 : i32
    return %c0_i32, %c0_i32_0 : i32, i32
  }
  func.func @transform_1(%arg0: i32, %arg1: memref<8xi32, #tpu.memory_space<smem>>, %arg2: memref<8xi32, #tpu.memory_space<smem>>) -> (i32, i32) {
    %c0_i32 = arith.constant 0 : i32
    %c0_i32_0 = arith.constant 0 : i32
    %c0_i32_1 = arith.constant 0 : i32
    return %c0_i32, %c0_i32_0 : i32, i32
  }
  func.func @transform_2(%arg0: i32, %arg1: memref<8xi32, #tpu.memory_space<smem>>, %arg2: memref<8xi32, #tpu.memory_space<smem>>) -> (i32, i32) {
    %c0_i32 = arith.constant 0 : i32
    %c0_i32_0 = arith.constant 0 : i32
    %c0_i32_1 = arith.constant 0 : i32
    return %c0_i32, %c0_i32_0 : i32, i32
  }
  func.func @transform_3(%arg0: i32, %arg1: memref<8xi32, #tpu.memory_space<smem>>, %arg2: memref<8xi32, #tpu.memory_space<smem>>) -> (i32, i32) {
    %c0_i32 = arith.constant 0 : i32
    %c0_i32_0 = arith.constant 0 : i32
    %c0_i32_1 = arith.constant 0 : i32
    return %c0_i32, %c0_i32_0 : i32, i32
  }
  func.func @transform_4(%arg0: i32, %arg1: memref<8xi32, #tpu.memory_space<smem>>, %arg2: memref<8xi32, #tpu.memory_space<smem>>) -> (i32, i32) {
    %c0_i32 = arith.constant 0 : i32
    %c0_i32_0 = arith.constant 0 : i32
    %c0_i32_1 = arith.constant 0 : i32
    return %c0_i32, %c0_i32_0 : i32, i32
  }
  func.func @transform_5(%arg0: i32, %arg1: memref<8xi32, #tpu.memory_space<smem>>, %arg2: memref<8xi32, #tpu.memory_space<smem>>) -> (i32, i32) {
    %c0_i32 = arith.constant 0 : i32
    %c0_i32_0 = arith.constant 0 : i32
    %c0_i32_1 = arith.constant 0 : i32
    return %c0_i32, %c0_i32_0 : i32, i32
  }
  func.func @transform_6(%arg0: i32, %arg1: memref<8xi32, #tpu.memory_space<smem>>, %arg2: memref<8xi32, #tpu.memory_space<smem>>) -> (i32, i32) {
    %c0_i32 = arith.constant 0 : i32
    %c0_i32_0 = arith.constant 0 : i32
    %c0_i32_1 = arith.constant 0 : i32
    return %c0_i32, %c0_i32_0 : i32, i32
  }
  func.func @transform_7(%arg0: i32, %arg1: memref<8xi32, #tpu.memory_space<smem>>, %arg2: memref<8xi32, #tpu.memory_space<smem>>) -> (i32, i32) {
    %c0_i32 = arith.constant 0 : i32
    %c0_i32_0 = arith.constant 0 : i32
    %c0_i32_1 = arith.constant 0 : i32
    return %c0_i32, %c0_i32_0 : i32, i32
  }
  func.func @transform_8(%arg0: i32, %arg1: memref<8xi32, #tpu.memory_space<smem>>, %arg2: memref<8xi32, #tpu.memory_space<smem>>) -> (i32, i32) {
    %c0_i32 = arith.constant 0 : i32
    %c0_i32_0 = arith.constant 0 : i32
    %c0_i32_1 = arith.constant 0 : i32
    return %c0_i32, %c0_i32_0 : i32, i32
  }
  func.func @transform_9(%arg0: i32, %arg1: memref<8xi32, #tpu.memory_space<smem>>, %arg2: memref<8xi32, #tpu.memory_space<smem>>) -> (i32, i32) {
    %c0_i32 = arith.constant 0 : i32
    %c0_i32_0 = arith.constant 0 : i32
    return %arg0, %c0_i32 : i32, i32
  }
}

module attributes {stable_mosaic.version = 11 : i64} {
  func.func @_gather_mlp_kernel(%arg0: i32, %arg1: memref<8xi32, #tpu.memory_space<smem>>, %arg2: memref<8xi32, #tpu.memory_space<smem>>, %arg3: memref<16x64xi32, #tpu.memory_space<vmem>>, %arg4: memref<24x64xi32, #tpu.memory_space<vmem>>, %arg5: memref<128x64xbf16, #tpu.memory_space<vmem>>, %arg6: memref<128x64xbf16, #tpu.memory_space<vmem>>, %arg7: memref<1x64xf32, #tpu.memory_space<vmem>>, %arg8: memref<64x32xbf16, #tpu.memory_space<vmem>>, %arg9: memref<1x32xf32, #tpu.memory_space<vmem>>, %arg10: memref<1x32xf32, #tpu.memory_space<vmem>>, %arg11: memref<1x1xf32, #tpu.memory_space<vmem>>, %arg12: memref<8x1xf32, #tpu.memory_space<vmem>>, %arg13: memref<8x128xi32, #tpu.memory_space<vmem>>) attributes {dimension_semantics = [#tpu.dimension_semantics<parallel>], iteration_bounds = array<i64: 1>, scalar_prefetch = 2 : i64, scratch_operands = 1 : i64, tpu.core_type = #tpu.core_type<tc>, window_params = [{pipeline_mode = #tpu.pipeline_mode<synchronous>, transform_indices = @transform_0, window_bounds = array<i64: 16, 64>}, {pipeline_mode = #tpu.pipeline_mode<synchronous>, transform_indices = @transform_1, window_bounds = array<i64: 24, 64>}, {pipeline_mode = #tpu.pipeline_mode<synchronous>, transform_indices = @transform_2, window_bounds = array<i64: 128, 64>}, {pipeline_mode = #tpu.pipeline_mode<synchronous>, transform_indices = @transform_3, window_bounds = array<i64: 128, 64>}, {pipeline_mode = #tpu.pipeline_mode<synchronous>, transform_indices = @transform_4, window_bounds = array<i64: 1, 64>}, {pipeline_mode = #tpu.pipeline_mode<synchronous>, transform_indices = @transform_5, window_bounds = array<i64: 64, 32>}, {pipeline_mode = #tpu.pipeline_mode<synchronous>, transform_indices = @transform_6, window_bounds = array<i64: 1, 32>}, {pipeline_mode = #tpu.pipeline_mode<synchronous>, transform_indices = @transform_7, window_bounds = array<i64: 1, 32>}, {pipeline_mode = #tpu.pipeline_mode<synchronous>, transform_indices = @transform_8, window_bounds = array<i64: 1, 1>}, {transform_indices = @transform_9, window_bounds = array<i64: 8, 1>}]} {
    %c8_i32 = arith.constant 8 : i32
    %0 = arith.muli %arg0, %c8_i32 : i32
    %1 = tpu.assume_multiple %0, 8 : i32
    %c0_i32 = arith.constant 0 : i32
    %2 = arith.addi %1, %c0_i32 : i32
    %3 = arith.index_cast %2 : i32 to index
    %4 = memref.load %arg1[%3] : memref<8xi32, #tpu.memory_space<smem>>
    %5 = arith.index_cast %4 : i32 to index
    %c0 = arith.constant 0 : index
    %6 = vector.load %arg3[%5, %c0] : memref<16x64xi32, #tpu.memory_space<vmem>>, vector<1x64xi32>
    %7 = vector.shape_cast %6 : vector<1x64xi32> to vector<64xi32>
    %8 = arith.index_cast %c0_i32 : i32 to index
    %c0_0 = arith.constant 0 : index
    %9 = vector.load %arg13[%8, %c0_0] : memref<8x128xi32, #tpu.memory_space<vmem>>, vector<1x64xi32>
    %10 = vector.shape_cast %9 : vector<1x64xi32> to vector<64xi32>
    %11 = vector.shape_cast %7 : vector<64xi32> to vector<1x64xi32>
    tpu.vector_store %arg13[%8, %c0_0], %11 {strides = array<i32>} : memref<8x128xi32, #tpu.memory_space<vmem>>, vector<1x64xi32>,
    %12 = arith.index_cast %2 : i32 to index
    %13 = memref.load %arg2[%12] : memref<8xi32, #tpu.memory_space<smem>>
    %14 = arith.index_cast %13 : i32 to index
    %c0_1 = arith.constant 0 : index
    %15 = vector.load %arg4[%14, %c0_1] : memref<24x64xi32, #tpu.memory_space<vmem>>, vector<1x64xi32>
    %16 = vector.shape_cast %15 : vector<1x64xi32> to vector<64xi32>
    %17 = arith.index_cast %c0_i32 : i32 to index
    %c64 = arith.constant 64 : index
    %18 = vector.load %arg13[%17, %c64] : memref<8x128xi32, #tpu.memory_space<vmem>>, vector<1x64xi32>
    %19 = vector.shape_cast %18 : vector<1x64xi32> to vector<64xi32>
    %20 = vector.shape_cast %16 : vector<64xi32> to vector<1x64xi32>
    tpu.vector_store %arg13[%17, %c64], %20 {strides = array<i32>} : memref<8x128xi32, #tpu.memory_space<vmem>>, vector<1x64xi32>,
    %c1_i32 = arith.constant 1 : i32
    %21 = arith.addi %1, %c1_i32 : i32
    %22 = arith.index_cast %21 : i32 to index
    %23 = memref.load %arg1[%22] : memref<8xi32, #tpu.memory_space<smem>>
    %24 = arith.index_cast %23 : i32 to index
    %c0_2 = arith.constant 0 : index
    %25 = vector.load %arg3[%24, %c0_2] : memref<16x64xi32, #tpu.memory_space<vmem>>, vector<1x64xi32>
    %26 = vector.shape_cast %25 : vector<1x64xi32> to vector<64xi32>
    %27 = arith.index_cast %c1_i32 : i32 to index
    %c0_3 = arith.constant 0 : index
    %28 = vector.load %arg13[%27, %c0_3] : memref<8x128xi32, #tpu.memory_space<vmem>>, vector<1x64xi32>
    %29 = vector.shape_cast %28 : vector<1x64xi32> to vector<64xi32>
    %30 = vector.shape_cast %26 : vector<64xi32> to vector<1x64xi32>
    tpu.vector_store %arg13[%27, %c0_3], %30 {strides = array<i32>} : memref<8x128xi32, #tpu.memory_space<vmem>>, vector<1x64xi32>,
    %31 = arith.index_cast %21 : i32 to index
    %32 = memref.load %arg2[%31] : memref<8xi32, #tpu.memory_space<smem>>
    %33 = arith.index_cast %32 : i32 to index
    %c0_4 = arith.constant 0 : index
    %34 = vector.load %arg4[%33, %c0_4] : memref<24x64xi32, #tpu.memory_space<vmem>>, vector<1x64xi32>
    %35 = vector.shape_cast %34 : vector<1x64xi32> to vector<64xi32>
    %36 = arith.index_cast %c1_i32 : i32 to index
    %c64_5 = arith.constant 64 : index
    %37 = vector.load %arg13[%36, %c64_5] : memref<8x128xi32, #tpu.memory_space<vmem>>, vector<1x64xi32>
    %38 = vector.shape_cast %37 : vector<1x64xi32> to vector<64xi32>
    %39 = vector.shape_cast %35 : vector<64xi32> to vector<1x64xi32>
    tpu.vector_store %arg13[%36, %c64_5], %39 {strides = array<i32>} : memref<8x128xi32, #tpu.memory_space<vmem>>, vector<1x64xi32>,
    %c2_i32 = arith.constant 2 : i32
    %40 = arith.addi %1, %c2_i32 : i32
    %41 = arith.index_cast %40 : i32 to index
    %42 = memref.load %arg1[%41] : memref<8xi32, #tpu.memory_space<smem>>
    %43 = arith.index_cast %42 : i32 to index
    %c0_6 = arith.constant 0 : index
    %44 = vector.load %arg3[%43, %c0_6] : memref<16x64xi32, #tpu.memory_space<vmem>>, vector<1x64xi32>
    %45 = vector.shape_cast %44 : vector<1x64xi32> to vector<64xi32>
    %46 = arith.index_cast %c2_i32 : i32 to index
    %c0_7 = arith.constant 0 : index
    %47 = vector.load %arg13[%46, %c0_7] : memref<8x128xi32, #tpu.memory_space<vmem>>, vector<1x64xi32>
    %48 = vector.shape_cast %47 : vector<1x64xi32> to vector<64xi32>
    %49 = vector.shape_cast %45 : vector<64xi32> to vector<1x64xi32>
    tpu.vector_store %arg13[%46, %c0_7], %49 {strides = array<i32>} : memref<8x128xi32, #tpu.memory_space<vmem>>, vector<1x64xi32>,
    %50 = arith.index_cast %40 : i32 to index
    %51 = memref.load %arg2[%50] : memref<8xi32, #tpu.memory_space<smem>>
    %52 = arith.index_cast %51 : i32 to index
    %c0_8 = arith.constant 0 : index
    %53 = vector.load %arg4[%52, %c0_8] : memref<24x64xi32, #tpu.memory_space<vmem>>, vector<1x64xi32>
    %54 = vector.shape_cast %53 : vector<1x64xi32> to vector<64xi32>
    %55 = arith.index_cast %c2_i32 : i32 to index
    %c64_9 = arith.constant 64 : index
    %56 = vector.load %arg13[%55, %c64_9] : memref<8x128xi32, #tpu.memory_space<vmem>>, vector<1x64xi32>
    %57 = vector.shape_cast %56 : vector<1x64xi32> to vector<64xi32>
    %58 = vector.shape_cast %54 : vector<64xi32> to vector<1x64xi32>
    tpu.vector_store %arg13[%55, %c64_9], %58 {strides = array<i32>} : memref<8x128xi32, #tpu.memory_space<vmem>>, vector<1x64xi32>,
    %c3_i32 = arith.constant 3 : i32
    %59 = arith.addi %1, %c3_i32 : i32
    %60 = arith.index_cast %59 : i32 to index
    %61 = memref.load %arg1[%60] : memref<8xi32, #tpu.memory_space<smem>>
    %62 = arith.index_cast %61 : i32 to index
    %c0_10 = arith.constant 0 : index
    %63 = vector.load %arg3[%62, %c0_10] : memref<16x64xi32, #tpu.memory_space<vmem>>, vector<1x64xi32>
    %64 = vector.shape_cast %63 : vector<1x64xi32> to vector<64xi32>
    %65 = arith.index_cast %c3_i32 : i32 to index
    %c0_11 = arith.constant 0 : index
    %66 = vector.load %arg13[%65, %c0_11] : memref<8x128xi32, #tpu.memory_space<vmem>>, vector<1x64xi32>
    %67 = vector.shape_cast %66 : vector<1x64xi32> to vector<64xi32>
    %68 = vector.shape_cast %64 : vector<64xi32> to vector<1x64xi32>
    tpu.vector_store %arg13[%65, %c0_11], %68 {strides = array<i32>} : memref<8x128xi32, #tpu.memory_space<vmem>>, vector<1x64xi32>,
    %69 = arith.index_cast %59 : i32 to index
    %70 = memref.load %arg2[%69] : memref<8xi32, #tpu.memory_space<smem>>
    %71 = arith.index_cast %70 : i32 to index
    %c0_12 = arith.constant 0 : index
    %72 = vector.load %arg4[%71, %c0_12] : memref<24x64xi32, #tpu.memory_space<vmem>>, vector<1x64xi32>
    %73 = vector.shape_cast %72 : vector<1x64xi32> to vector<64xi32>
    %74 = arith.index_cast %c3_i32 : i32 to index
    %c64_13 = arith.constant 64 : index
    %75 = vector.load %arg13[%74, %c64_13] : memref<8x128xi32, #tpu.memory_space<vmem>>, vector<1x64xi32>
    %76 = vector.shape_cast %75 : vector<1x64xi32> to vector<64xi32>
    %77 = vector.shape_cast %73 : vector<64xi32> to vector<1x64xi32>
    tpu.vector_store %arg13[%74, %c64_13], %77 {strides = array<i32>} : memref<8x128xi32, #tpu.memory_space<vmem>>, vector<1x64xi32>,
    %c4_i32 = arith.constant 4 : i32
    %78 = arith.addi %1, %c4_i32 : i32
    %79 = arith.index_cast %78 : i32 to index
    %80 = memref.load %arg1[%79] : memref<8xi32, #tpu.memory_space<smem>>
    %81 = arith.index_cast %80 : i32 to index
    %c0_14 = arith.constant 0 : index
    %82 = vector.load %arg3[%81, %c0_14] : memref<16x64xi32, #tpu.memory_space<vmem>>, vector<1x64xi32>
    %83 = vector.shape_cast %82 : vector<1x64xi32> to vector<64xi32>
    %84 = arith.index_cast %c4_i32 : i32 to index
    %c0_15 = arith.constant 0 : index
    %85 = vector.load %arg13[%84, %c0_15] : memref<8x128xi32, #tpu.memory_space<vmem>>, vector<1x64xi32>
    %86 = vector.shape_cast %85 : vector<1x64xi32> to vector<64xi32>
    %87 = vector.shape_cast %83 : vector<64xi32> to vector<1x64xi32>
    tpu.vector_store %arg13[%84, %c0_15], %87 {strides = array<i32>} : memref<8x128xi32, #tpu.memory_space<vmem>>, vector<1x64xi32>,
    %88 = arith.index_cast %78 : i32 to index
    %89 = memref.load %arg2[%88] : memref<8xi32, #tpu.memory_space<smem>>
    %90 = arith.index_cast %89 : i32 to index
    %c0_16 = arith.constant 0 : index
    %91 = vector.load %arg4[%90, %c0_16] : memref<24x64xi32, #tpu.memory_space<vmem>>, vector<1x64xi32>
    %92 = vector.shape_cast %91 : vector<1x64xi32> to vector<64xi32>
    %93 = arith.index_cast %c4_i32 : i32 to index
    %c64_17 = arith.constant 64 : index
    %94 = vector.load %arg13[%93, %c64_17] : memref<8x128xi32, #tpu.memory_space<vmem>>, vector<1x64xi32>
    %95 = vector.shape_cast %94 : vector<1x64xi32> to vector<64xi32>
    %96 = vector.shape_cast %92 : vector<64xi32> to vector<1x64xi32>
    tpu.vector_store %arg13[%93, %c64_17], %96 {strides = array<i32>} : memref<8x128xi32, #tpu.memory_space<vmem>>, vector<1x64xi32>,
    %c5_i32 = arith.constant 5 : i32
    %97 = arith.addi %1, %c5_i32 : i32
    %98 = arith.index_cast %97 : i32 to index
    %99 = memref.load %arg1[%98] : memref<8xi32, #tpu.memory_space<smem>>
    %100 = arith.index_cast %99 : i32 to index
    %c0_18 = arith.constant 0 : index
    %101 = vector.load %arg3[%100, %c0_18] : memref<16x64xi32, #tpu.memory_space<vmem>>, vector<1x64xi32>
    %102 = vector.shape_cast %101 : vector<1x64xi32> to vector<64xi32>
    %103 = arith.index_cast %c5_i32 : i32 to index
    %c0_19 = arith.constant 0 : index
    %104 = vector.load %arg13[%103, %c0_19] : memref<8x128xi32, #tpu.memory_space<vmem>>, vector<1x64xi32>
    %105 = vector.shape_cast %104 : vector<1x64xi32> to vector<64xi32>
    %106 = vector.shape_cast %102 : vector<64xi32> to vector<1x64xi32>
    tpu.vector_store %arg13[%103, %c0_19], %106 {strides = array<i32>} : memref<8x128xi32, #tpu.memory_space<vmem>>, vector<1x64xi32>,
    %107 = arith.index_cast %97 : i32 to index
    %108 = memref.load %arg2[%107] : memref<8xi32, #tpu.memory_space<smem>>
    %109 = arith.index_cast %108 : i32 to index
    %c0_20 = arith.constant 0 : index
    %110 = vector.load %arg4[%109, %c0_20] : memref<24x64xi32, #tpu.memory_space<vmem>>, vector<1x64xi32>
    %111 = vector.shape_cast %110 : vector<1x64xi32> to vector<64xi32>
    %112 = arith.index_cast %c5_i32 : i32 to index
    %c64_21 = arith.constant 64 : index
    %113 = vector.load %arg13[%112, %c64_21] : memref<8x128xi32, #tpu.memory_space<vmem>>, vector<1x64xi32>
    %114 = vector.shape_cast %113 : vector<1x64xi32> to vector<64xi32>
    %115 = vector.shape_cast %111 : vector<64xi32> to vector<1x64xi32>
    tpu.vector_store %arg13[%112, %c64_21], %115 {strides = array<i32>} : memref<8x128xi32, #tpu.memory_space<vmem>>, vector<1x64xi32>,
    %c6_i32 = arith.constant 6 : i32
    %116 = arith.addi %1, %c6_i32 : i32
    %117 = arith.index_cast %116 : i32 to index
    %118 = memref.load %arg1[%117] : memref<8xi32, #tpu.memory_space<smem>>
    %119 = arith.index_cast %118 : i32 to index
    %c0_22 = arith.constant 0 : index
    %120 = vector.load %arg3[%119, %c0_22] : memref<16x64xi32, #tpu.memory_space<vmem>>, vector<1x64xi32>
    %121 = vector.shape_cast %120 : vector<1x64xi32> to vector<64xi32>
    %122 = arith.index_cast %c6_i32 : i32 to index
    %c0_23 = arith.constant 0 : index
    %123 = vector.load %arg13[%122, %c0_23] : memref<8x128xi32, #tpu.memory_space<vmem>>, vector<1x64xi32>
    %124 = vector.shape_cast %123 : vector<1x64xi32> to vector<64xi32>
    %125 = vector.shape_cast %121 : vector<64xi32> to vector<1x64xi32>
    tpu.vector_store %arg13[%122, %c0_23], %125 {strides = array<i32>} : memref<8x128xi32, #tpu.memory_space<vmem>>, vector<1x64xi32>,
    %126 = arith.index_cast %116 : i32 to index
    %127 = memref.load %arg2[%126] : memref<8xi32, #tpu.memory_space<smem>>
    %128 = arith.index_cast %127 : i32 to index
    %c0_24 = arith.constant 0 : index
    %129 = vector.load %arg4[%128, %c0_24] : memref<24x64xi32, #tpu.memory_space<vmem>>, vector<1x64xi32>
    %130 = vector.shape_cast %129 : vector<1x64xi32> to vector<64xi32>
    %131 = arith.index_cast %c6_i32 : i32 to index
    %c64_25 = arith.constant 64 : index
    %132 = vector.load %arg13[%131, %c64_25] : memref<8x128xi32, #tpu.memory_space<vmem>>, vector<1x64xi32>
    %133 = vector.shape_cast %132 : vector<1x64xi32> to vector<64xi32>
    %134 = vector.shape_cast %130 : vector<64xi32> to vector<1x64xi32>
    tpu.vector_store %arg13[%131, %c64_25], %134 {strides = array<i32>} : memref<8x128xi32, #tpu.memory_space<vmem>>, vector<1x64xi32>,
    %c7_i32 = arith.constant 7 : i32
    %135 = arith.addi %1, %c7_i32 : i32
    %136 = arith.index_cast %135 : i32 to index
    %137 = memref.load %arg1[%136] : memref<8xi32, #tpu.memory_space<smem>>
    %138 = arith.index_cast %137 : i32 to index
    %c0_26 = arith.constant 0 : index
    %139 = vector.load %arg3[%138, %c0_26] : memref<16x64xi32, #tpu.memory_space<vmem>>, vector<1x64xi32>
    %140 = vector.shape_cast %139 : vector<1x64xi32> to vector<64xi32>
    %141 = arith.index_cast %c7_i32 : i32 to index
    %c0_27 = arith.constant 0 : index
    %142 = vector.load %arg13[%141, %c0_27] : memref<8x128xi32, #tpu.memory_space<vmem>>, vector<1x64xi32>
    %143 = vector.shape_cast %142 : vector<1x64xi32> to vector<64xi32>
    %144 = vector.shape_cast %140 : vector<64xi32> to vector<1x64xi32>
    tpu.vector_store %arg13[%141, %c0_27], %144 {strides = array<i32>} : memref<8x128xi32, #tpu.memory_space<vmem>>, vector<1x64xi32>,
    %145 = arith.index_cast %135 : i32 to index
    %146 = memref.load %arg2[%145] : memref<8xi32, #tpu.memory_space<smem>>
    %147 = arith.index_cast %146 : i32 to index
    %c0_28 = arith.constant 0 : index
    %148 = vector.load %arg4[%147, %c0_28] : memref<24x64xi32, #tpu.memory_space<vmem>>, vector<1x64xi32>
    %149 = vector.shape_cast %148 : vector<1x64xi32> to vector<64xi32>
    %150 = arith.index_cast %c7_i32 : i32 to index
    %c64_29 = arith.constant 64 : index
    %151 = vector.load %arg13[%150, %c64_29] : memref<8x128xi32, #tpu.memory_space<vmem>>, vector<1x64xi32>
    %152 = vector.shape_cast %151 : vector<1x64xi32> to vector<64xi32>
    %153 = vector.shape_cast %149 : vector<64xi32> to vector<1x64xi32>
    tpu.vector_store %arg13[%150, %c64_29], %153 {strides = array<i32>} : memref<8x128xi32, #tpu.memory_space<vmem>>, vector<1x64xi32>,
    %c8_i32_30 = arith.constant 8 : i32
    %c0_31 = arith.constant 0 : index
    %c0_32 = arith.constant 0 : index
    %154 = vector.load %arg13[%c0_31, %c0_32] : memref<8x128xi32, #tpu.memory_space<vmem>>, vector<8x128xi32>
    %c16_i32 = arith.constant 16 : i32
    %155 = vector.broadcast %c16_i32 : i32 to vector<8x128xi32>
    %156 = arith.shli %154, %155 : vector<8x128xi32>
    %157 = tpu.bitcast %156 : vector<8x128xi32> -> vector<8x128xf32>
    %c16_i32_33 = arith.constant 16 : i32
    %158 = vector.broadcast %c16_i32_33 : i32 to vector<8x128xi32>
    %159 = arith.shrui %154, %158 : vector<8x128xi32>
    %c16_i32_34 = arith.constant 16 : i32
    %160 = vector.broadcast %c16_i32_34 : i32 to vector<8x128xi32>
    %161 = arith.shli %159, %160 : vector<8x128xi32>
    %162 = tpu.bitcast %161 : vector<8x128xi32> -> vector<8x128xf32>
    %163 = arith.truncf %157 : vector<8x128xf32> to vector<8x128xbf16>
    %c0_35 = arith.constant 0 : index
    %c0_36 = arith.constant 0 : index
    %164 = vector.load %arg5[%c0_35, %c0_36] : memref<128x64xbf16, #tpu.memory_space<vmem>>, vector<128x64xbf16>
    %cst = arith.constant dense<0.000000e+00> : vector<8x64xf32>
    %165 = tpu.matmul %163, %164, %cst {dimension_numbers = #tpu.dot_dimension_numbers<[1], [0], [0], [1], [0, 0, 1, 1], [], []>} : vector<8x128xbf16>, vector<128x64xbf16>, vector<8x64xf32> -> vector<8x64xf32>
    %166 = arith.truncf %162 : vector<8x128xf32> to vector<8x128xbf16>
    %c0_37 = arith.constant 0 : index
    %c0_38 = arith.constant 0 : index
    %167 = vector.load %arg6[%c0_37, %c0_38] : memref<128x64xbf16, #tpu.memory_space<vmem>>, vector<128x64xbf16>
    %cst_39 = arith.constant dense<0.000000e+00> : vector<8x64xf32>
    %168 = tpu.matmul %166, %167, %cst_39 {dimension_numbers = #tpu.dot_dimension_numbers<[1], [0], [0], [1], [0, 0, 1, 1], [], []>} : vector<8x128xbf16>, vector<128x64xbf16>, vector<8x64xf32> -> vector<8x64xf32>
    %169 = arith.addf %165, %168 : vector<8x64xf32>
    %c0_40 = arith.constant 0 : index
    %c0_41 = arith.constant 0 : index
    %170 = vector.load %arg7[%c0_40, %c0_41] : memref<1x64xf32, #tpu.memory_space<vmem>>, vector<1x64xf32>
    %171 = vector.broadcast %170 : vector<1x64xf32> to vector<8x64xf32>
    %172 = arith.addf %169, %171 : vector<8x64xf32>
    %cst_42 = arith.constant 0.000000e+00 : f32
    %173 = vector.broadcast %cst_42 : f32 to vector<8x64xf32>
    %174 = arith.maximumf %172, %173 : vector<8x64xf32>
    %175 = arith.truncf %174 : vector<8x64xf32> to vector<8x64xbf16>
    %c0_43 = arith.constant 0 : index
    %c0_44 = arith.constant 0 : index
    %176 = vector.load %arg8[%c0_43, %c0_44] : memref<64x32xbf16, #tpu.memory_space<vmem>>, vector<64x32xbf16>
    %cst_45 = arith.constant dense<0.000000e+00> : vector<8x32xf32>
    %177 = tpu.matmul %175, %176, %cst_45 {dimension_numbers = #tpu.dot_dimension_numbers<[1], [0], [0], [1], [0, 0, 1, 1], [], []>} : vector<8x64xbf16>, vector<64x32xbf16>, vector<8x32xf32> -> vector<8x32xf32>
    %c0_46 = arith.constant 0 : index
    %c0_47 = arith.constant 0 : index
    %178 = vector.load %arg9[%c0_46, %c0_47] : memref<1x32xf32, #tpu.memory_space<vmem>>, vector<1x32xf32>
    %179 = vector.broadcast %178 : vector<1x32xf32> to vector<8x32xf32>
    %180 = arith.addf %177, %179 : vector<8x32xf32>
    %cst_48 = arith.constant 0.000000e+00 : f32
    %181 = vector.broadcast %cst_48 : f32 to vector<8x32xf32>
    %182 = arith.maximumf %180, %181 : vector<8x32xf32>
    %c0_49 = arith.constant 0 : index
    %c0_50 = arith.constant 0 : index
    %183 = vector.load %arg10[%c0_49, %c0_50] : memref<1x32xf32, #tpu.memory_space<vmem>>, vector<1x32xf32>
    %184 = vector.broadcast %183 : vector<1x32xf32> to vector<8x32xf32>
    %185 = arith.mulf %182, %184 : vector<8x32xf32>
    %cst_51 = arith.constant dense<0.000000e+00> : vector<8xf32>
    %186 = vector.multi_reduction <add>, %185, %cst_51 [1] : vector<8x32xf32> to vector<8xf32>
    %187 = vector.shape_cast %186 : vector<8xf32> to vector<8x1xf32>
    %c0_52 = arith.constant 0 : index
    %c0_53 = arith.constant 0 : index
    %188 = vector.load %arg11[%c0_52, %c0_53] : memref<1x1xf32, #tpu.memory_space<vmem>>, vector<1x1xf32>
    %189 = vector.broadcast %188 : vector<1x1xf32> to vector<8x1xf32>
    %190 = arith.addf %187, %189 : vector<8x1xf32>
    %191 = arith.negf %190 : vector<8x1xf32>
    %192 = math.exp %191 : vector<8x1xf32>
    %cst_54 = arith.constant 1.000000e+00 : f32
    %193 = vector.broadcast %cst_54 : f32 to vector<8x1xf32>
    %194 = arith.addf %193, %192 : vector<8x1xf32>
    %195 = arith.divf %193, %194 : vector<8x1xf32>
    %cst_55 = arith.constant 4.000000e+00 : f32
    %196 = vector.broadcast %cst_55 : f32 to vector<8x1xf32>
    %197 = arith.mulf %195, %196 : vector<8x1xf32>
    %cst_56 = arith.constant 1.000000e+00 : f32
    %198 = vector.broadcast %cst_56 : f32 to vector<8x1xf32>
    %199 = arith.addf %197, %198 : vector<8x1xf32>
    %c0_57 = arith.constant 0 : index
    %c0_58 = arith.constant 0 : index
    %200 = vector.load %arg12[%c0_57, %c0_58] : memref<8x1xf32, #tpu.memory_space<vmem>>, vector<8x1xf32>
    tpu.vector_store %arg12[%c0_57, %c0_58], %199 {strides = array<i32>} : memref<8x1xf32, #tpu.memory_space<vmem>>, vector<8x1xf32>,
    return
  }
  func.func @transform_0(%arg0: i32, %arg1: memref<8xi32, #tpu.memory_space<smem>>, %arg2: memref<8xi32, #tpu.memory_space<smem>>) -> (i32, i32) {
    %c0_i32 = arith.constant 0 : i32
    %c0_i32_0 = arith.constant 0 : i32
    %c0_i32_1 = arith.constant 0 : i32
    return %c0_i32, %c0_i32_0 : i32, i32
  }
  func.func @transform_1(%arg0: i32, %arg1: memref<8xi32, #tpu.memory_space<smem>>, %arg2: memref<8xi32, #tpu.memory_space<smem>>) -> (i32, i32) {
    %c0_i32 = arith.constant 0 : i32
    %c0_i32_0 = arith.constant 0 : i32
    %c0_i32_1 = arith.constant 0 : i32
    return %c0_i32, %c0_i32_0 : i32, i32
  }
  func.func @transform_2(%arg0: i32, %arg1: memref<8xi32, #tpu.memory_space<smem>>, %arg2: memref<8xi32, #tpu.memory_space<smem>>) -> (i32, i32) {
    %c0_i32 = arith.constant 0 : i32
    %c0_i32_0 = arith.constant 0 : i32
    %c0_i32_1 = arith.constant 0 : i32
    return %c0_i32, %c0_i32_0 : i32, i32
  }
  func.func @transform_3(%arg0: i32, %arg1: memref<8xi32, #tpu.memory_space<smem>>, %arg2: memref<8xi32, #tpu.memory_space<smem>>) -> (i32, i32) {
    %c0_i32 = arith.constant 0 : i32
    %c0_i32_0 = arith.constant 0 : i32
    %c0_i32_1 = arith.constant 0 : i32
    return %c0_i32, %c0_i32_0 : i32, i32
  }
  func.func @transform_4(%arg0: i32, %arg1: memref<8xi32, #tpu.memory_space<smem>>, %arg2: memref<8xi32, #tpu.memory_space<smem>>) -> (i32, i32) {
    %c0_i32 = arith.constant 0 : i32
    %c0_i32_0 = arith.constant 0 : i32
    %c0_i32_1 = arith.constant 0 : i32
    return %c0_i32, %c0_i32_0 : i32, i32
  }
  func.func @transform_5(%arg0: i32, %arg1: memref<8xi32, #tpu.memory_space<smem>>, %arg2: memref<8xi32, #tpu.memory_space<smem>>) -> (i32, i32) {
    %c0_i32 = arith.constant 0 : i32
    %c0_i32_0 = arith.constant 0 : i32
    %c0_i32_1 = arith.constant 0 : i32
    return %c0_i32, %c0_i32_0 : i32, i32
  }
  func.func @transform_6(%arg0: i32, %arg1: memref<8xi32, #tpu.memory_space<smem>>, %arg2: memref<8xi32, #tpu.memory_space<smem>>) -> (i32, i32) {
    %c0_i32 = arith.constant 0 : i32
    %c0_i32_0 = arith.constant 0 : i32
    %c0_i32_1 = arith.constant 0 : i32
    return %c0_i32, %c0_i32_0 : i32, i32
  }
  func.func @transform_7(%arg0: i32, %arg1: memref<8xi32, #tpu.memory_space<smem>>, %arg2: memref<8xi32, #tpu.memory_space<smem>>) -> (i32, i32) {
    %c0_i32 = arith.constant 0 : i32
    %c0_i32_0 = arith.constant 0 : i32
    %c0_i32_1 = arith.constant 0 : i32
    return %c0_i32, %c0_i32_0 : i32, i32
  }
  func.func @transform_8(%arg0: i32, %arg1: memref<8xi32, #tpu.memory_space<smem>>, %arg2: memref<8xi32, #tpu.memory_space<smem>>) -> (i32, i32) {
    %c0_i32 = arith.constant 0 : i32
    %c0_i32_0 = arith.constant 0 : i32
    %c0_i32_1 = arith.constant 0 : i32
    return %c0_i32, %c0_i32_0 : i32, i32
  }
  func.func @transform_9(%arg0: i32, %arg1: memref<8xi32, #tpu.memory_space<smem>>, %arg2: memref<8xi32, #tpu.memory_space<smem>>) -> (i32, i32) {
    %c0_i32 = arith.constant 0 : i32
    %c0_i32_0 = arith.constant 0 : i32
    return %arg0, %c0_i32 : i32, i32
  }
}

</mosaic_0001>

<bundles_post_ra>
// kernel: tpu_custom_call.1
= control target key start
LH: loop header
LB: loop body
LE: loop exit
PB: predicated region body
PF: predicated region fallthrough
CT: control target
= control target key end

     0   :  { %s944_s0 = inlined_call_operand.vmem [shape: s32[8], index: 0, kind: input, shape index: {}]   ;;  %s945_s2 = inlined_call_operand.vmem [shape: u32[16,64], index: 2, kind: input, shape index: {}]   ;;  %s946_s3 = inlined_call_operand.vmem [shape: u32[24,64], index: 3, kind: input, shape index: {}]   ;;  %s947_s4 = inlined_call_operand.vmem [shape: bf16[128,64], index: 4, kind: input, shape index: {}]   ;;  %s948_s5 = inlined_call_operand.vmem [shape: bf16[128,64], index: 5, kind: input, shape index: {}]   ;;  %s949_s6 = inlined_call_operand.vmem [shape: f32[1,64], index: 6, kind: input, shape index: {}]   ;;  %s950_s7 = inlined_call_operand.vmem [shape: bf16[64,32], index: 7, kind: input, shape index: {}]   ;;  %s951_s8 = inlined_call_operand.vmem [shape: f32[1,32], index: 8, kind: input, shape index: {}]   ;;  %s952_s9 = inlined_call_operand.vmem [shape: f32[1,32], index: 9, kind: input, shape index: {}]   ;;  %s953_s11 = inlined_call_operand.vmem [shape: f32[8,1], index: 11, kind: output, shape index: {}]   ;;  %s954_s1 = inlined_call_operand.vmem [shape: s32[8], index: 1, kind: input, shape index: {}]   ;;  %s955_s10 = inlined_call_operand.<no memory space> [shape: f32[1,1], index: 10, kind: input, shape index: {}]  }
   0x1   :  { %s16_s19 = sshll.u32 %s944_s0, 4  ;;  %s20_s22 = sshll.u32 %s954_s1, 4  ;;  %v24_v0 = vstv %s955_s10  ;;  %s17_s19 = int_to_ptr.vmem [resolvable:$true] %s16_s19  ;;  %s21_s22 = int_to_ptr.vmem [resolvable:$true] %s20_s22 }
   0x2   :  { %25 = vst [vmem:[#allocation6] sm:$0x1] %v24_v0  ;;  %s641_s25 = scalar_lea.vmem %s17_s19, 16  ;;  %p646_p1 = scmp.lt.s32.totalorder %s17_s19, %s17_s19 }
   0x3   :  { %p642_p0 = scmp.ne.s32.totalorder %s17_s19, %s641_s25  ;;  %p647_p2 = scmp.lt.s32.totalorder %s641_s25, %s641_s25 }
   0x5   :  { %p648_p3 = por %p647_p2, %p646_p1 }
   0x7   :  { %p649_p4 = pnand %p648_p3, %p642_p0 }
   0x9   :  { %652 = shalt.err (!%p649_p4)  }
   0xa   :  { %s667_s26 = smov [#allocation4]   ;;  %s653_s0 = scalar_lea.vmem %s21_s22, 16 }
   0xb   :  { %19 = dma.vmem_to_smem %s17_s19, 16, %s667_s26, [#allocation3] }
   0xc   :  { %p654_p5 = scmp.ne.s32.totalorder %s21_s22, %s653_s0  ;;  %p658_p6 = scmp.lt.s32.totalorder %s21_s22, %s21_s22 }
   0xd   :  { %p659_p7 = scmp.lt.s32.totalorder %s653_s0, %s653_s0 }
   0xf   :  { %p660_p8 = por %p659_p7, %p658_p6 }
  0x11   :  { %p661_p9 = pnand %p660_p8, %p654_p5 }
  0x13   :  { %664 = shalt.err (!%p661_p9)  }
  0x14   :  { %s668_s1 = smov [#allocation5]  }
  0x15   :  { %23 = dma.vmem_to_smem %s21_s22, 16, %s668_s1, [#allocation3] }
  0x16   :  { %665 = dma.done.wait [#allocation3], 32 }
  0x17   :  { %666 = vsyncadd [#allocation3], 4294967264 }
  0x18   :  { %27 = sfence }
  0x19   :  { %s500_s10 = sld [smem:[#allocation5 + $0x2]]  ;;  %v669_v1 = vmov 0.0   ;;  %v617_v2 = vld [vmem:[%s947_s4 + $0x38] sm:$0xff]   ;;  %v619_v4 = vld [vmem:[%s947_s4 + $0x30] sm:$0xff]   ;;  %v621_v7 = vld [vmem:[%s947_s4 + $0x28] sm:$0xff]   ;;  %vm51_vm0 = vcmask 516096  }
  0x1a   :  { %s53_s27 = sld [smem:[#allocation5]]  ;;  %580 = vmatprep.subr.bf16.mxu1 %v669_v1  ;;  %560 = vmatprep.subr.bf16.mxu0 %v669_v1  ;;  %v618_v3 = vld [vmem:[%s948_s5 + $0x38] sm:$0xff]   ;;  %v620_v5 = vld [vmem:[%s948_s5 + $0x30] sm:$0xff]   ;;  %v622_v8 = vld [vmem:[%s948_s5 + $0x28] sm:$0xff]   ;;  %vm671_vm1 = vmmov 0   ;;  %vm58_vm2 = vcmask 1040896  }
  0x1b   :  { %s502_s13 = sld [smem:[#allocation5 + $0x3]]  ;;  %581 = vmatpush3.bf16.msra.mxu1 %v617_v2  ;;  %561 = vmatpush3.bf16.msra.mxu0 %v618_v3  ;;  %v623_v12 = vld [vmem:[%s947_s4 + $0x20] sm:$0xff]   ;;  %v625_v20 = vld [vmem:[%s947_s4 + $0x18] sm:$0xff]   ;;  %v627_v24 = vld [vmem:[%s947_s4 + $0x10] sm:$0xff]   ;;  %vm402_vm3 = vcmask 523264   ;;  %vm455_vm4 = vcmask 261120  }
  0x1c   :  { %s749_s14 = sld [smem:[#allocation5 + $0x1]]  ;;  %582 = vmatprep.subr.bf16.mxu1 %v669_v1  ;;  %562 = vmatprep.subr.bf16.mxu0 %v669_v1  ;;  %v624_v14 = vld [vmem:[%s948_s5 + $0x20] sm:$0xff]   ;;  %v626_v22 = vld [vmem:[%s948_s5 + $0x18] sm:$0xff]   ;;  %v628_v25 = vld [vmem:[%s948_s5 + $0x10] sm:$0xff]   ;;  %vm475_vm5 = vcmask 7168  }
  0x1d   :  { %s751_s15 = sld [smem:[#allocation5 + $0x5]]  ;;  %596 = vmatprep.mubr.msk.bf16.mxu1 %vm671_vm1, %v669_v1  ;;  %576 = vmatprep.mubr.msk.bf16.mxu0 %vm671_vm1, %v669_v1  ;;  %v629_v27 = vld [vmem:[%s947_s4 + $0x8] sm:$0xff]   ;;  %v631_v31 = vld [vmem:[%s947_s4] sm:$0xff]   ;;  %v633_v47 = vld [vmem:[%s950_s7 + $0x18] sm:$0xff]  }
  0x1e   :  { %s761_s20 = sld [smem:[#allocation5 + $0x4]]  ;;  %v630_v29 = vld [vmem:[%s948_s5 + $0x8] sm:$0xff]   ;;  %v632_v33 = vld [vmem:[%s948_s5] sm:$0xff]   ;;  %v634_v49 = vld [vmem:[%s950_s7 + $0x10] sm:$0xff]  }
  0x1f   :  { %s77_s23 = scalar_lea.vmem %s946_s3, %s500_s10  ;;  %s766_s24 = sld [smem:[#allocation5 + $0x7]]  ;;  %583 = vmatpush3.bf16.msra.mxu1 %v619_v4  ;;  %563 = vmatpush3.bf16.msra.mxu0 %v620_v5  ;;  %v635_v50 = vld [vmem:[%s950_s7 + $0x8] sm:$0xff]   ;;  %v636_v51 = vld [vmem:[%s950_s7] sm:$0xff]  }
  0x20   :  { %v78_v6 = vld [vmem:[%s77_s23] sm:$0x1]  ;;  %s54_s0 = scalar_lea.vmem %s946_s3, %s53_s27  ;;  %s771_s1 = sld [smem:[#allocation5 + $0x6]]  ;;  %584 = vmatprep.subr.bf16.mxu1 %v669_v1  ;;  %564 = vmatprep.subr.bf16.mxu0 %v669_v1 }
  0x21   :  { %s670_s10 = smov 64   ;;  %v55_v9 = vld [vmem:[%s54_s0] sm:$0x1]  ;;  %s88_s17 = scalar_lea.vmem %s946_s3, %s502_s13 }
  0x22   :  { %79 = vrot.lane.b32.xlu1 %v78_v6, %s670_s10  ;;  %s783_s18 = sld [smem:[#allocation4 + $0x2]]  ;;  %56 = vrot.lane.b32.xlu0 %v55_v9, %s670_s10  ;;  %v89_v10 = vld [vmem:[%s88_s17] sm:$0x1]  ;;  %s66_s22 = scalar_lea.vmem %s946_s3, %s749_s14 }
  0x23   :  { %s791_s23 = sld [smem:[#allocation4]]  ;;  %v67_v11 = vld [vmem:[%s66_s22] sm:$0x1]  ;;  %s110_s26 = scalar_lea.vmem %s946_s3, %s751_s15  ;;  %585 = vmatpush3.bf16.msra.mxu1 %v621_v7  ;;  %565 = vmatpush3.bf16.msra.mxu0 %v622_v8 }
  0x24   :  { %s798_s0 = sld [smem:[#allocation4 + $0x3]]  ;;  %s99_s30 = scalar_lea.vmem %s946_s3, %s761_s20  ;;  %586 = vmatprep.subr.bf16.mxu1 %v669_v1  ;;  %v111_v13 = vld [vmem:[%s110_s26] sm:$0x1]  ;;  %566 = vmatprep.subr.bf16.mxu0 %v669_v1 }
  0x25   :  { %s804_s14 = sld [smem:[#allocation4 + $0x1]]  ;;  %s132_s27 = scalar_lea.vmem %s946_s3, %s766_s24  ;;  %v100_v15 = vld [vmem:[%s99_s30] sm:$0x1] }
  0x26   :  { %90 = vrot.lane.b32.xlu1 %v89_v10, %s670_s10  ;;  %68 = vrot.lane.b32.xlu0 %v67_v11, %s670_s10  ;;  %s121_s21 = scalar_lea.vmem %s946_s3, %s771_s1  ;;  %s828_s29 = sld [smem:[#allocation4 + $0x5]]  ;;  %v133_v16 = vld [vmem:[%s132_s27] sm:$0x1]  ;;  %v535_v11 = vld [vmem:[#allocation6] ss:$0 sm:$0xff] }
  0x27   :  { %587 = vmatpush3.bf16.msra.mxu1 %v623_v12  ;;  %567 = vmatpush3.bf16.msra.mxu0 %v624_v14  ;;  %s838_s30 = sld [smem:[#allocation4 + $0x4]]  ;;  %v122_v18 = vld [vmem:[%s121_s21] sm:$0x1] }
  0x28   :  { %s73_s28 = scalar_lea.vmem %s945_s2, %s783_s18  ;;  %588 = vmatprep.subr.bf16.mxu1 %v669_v1  ;;  %568 = vmatprep.subr.bf16.mxu0 %v669_v1  ;;  %s509_s21 = sld [smem:[#allocation4 + $0x7]]  ;;  %v527_v54 = vld [vmem:[%s949_s6] ss:$0 sm:$0xff] }
  0x29   :  { %v74_v17 = vld [vmem:[%s73_s28] sm:$0x1]  ;;  %s49_s26 = scalar_lea.vmem %s945_s2, %s791_s23  ;;  %s507_s22 = sld [smem:[#allocation4 + $0x6]] }
  0x2a   :  { %112 = vrot.lane.b32.xlu1 %v111_v13, %s670_s10  ;;  %75 = vst.msk [vmem:[#allocation2 + $0x2] sm:$0x1] %vm51_vm0, %v74_v17  ;;  %v50_v19 = vld [vmem:[%s49_s26] sm:$0x1]  ;;  %s84_s16 = scalar_lea.vmem %s945_s2, %s798_s0  ;;  %101 = vrot.lane.b32.xlu0 %v100_v15, %s670_s10 }
  0x2b   :  { %52 = vst.msk [vmem:[#allocation2] sm:$0x1] %vm51_vm0, %v50_v19  ;;  %v85_v21 = vld [vmem:[%s84_s16] sm:$0x1]  ;;  %s62_s20 = scalar_lea.vmem %s945_s2, %s804_s14  ;;  %589 = vmatpush3.bf16.msra.mxu1 %v625_v20  ;;  %569 = vmatpush3.bf16.msra.mxu0 %v626_v22 }
  0x2c   :  { %86 = vst.msk [vmem:[#allocation2 + $0x3] sm:$0x1] %vm51_vm0, %v85_v21  ;;  %v63_v23 = vld [vmem:[%s62_s20] sm:$0x1]  ;;  %s106_s1 = scalar_lea.vmem %s945_s2, %s828_s29  ;;  %590 = vmatprep.subr.bf16.mxu1 %v669_v1  ;;  %570 = vmatprep.subr.bf16.mxu0 %v669_v1 }
  0x2d   :  { %64 = vst.msk [vmem:[#allocation2 + $0x1] sm:$0x1] %vm51_vm0, %v63_v23  ;;  %v107_v26 = vld [vmem:[%s106_s1] sm:$0x1]  ;;  %s95_s12 = scalar_lea.vmem %s945_s2, %s838_s30 }
  0x2e   :  { %134 = vrot.lane.b32.xlu1 %v133_v16, %s670_s10  ;;  %123 = vrot.lane.b32.xlu0 %v122_v18, %s670_s10  ;;  %108 = vst.msk [vmem:[#allocation2 + $0x5] sm:$0x1] %vm51_vm0, %v107_v26  ;;  %v96_v28 = vld [vmem:[%s95_s12] sm:$0x1]  ;;  %s128_s30 = scalar_lea.vmem %s945_s2, %s509_s21 }
  0x2f   :  { %97 = vst.msk [vmem:[#allocation2 + $0x4] sm:$0x1] %vm51_vm0, %v96_v28  ;;  %591 = vmatpush3.bf16.msra.mxu1 %v627_v24  ;;  %571 = vmatpush3.bf16.msra.mxu0 %v628_v25  ;;  %v129_v30 = vld [vmem:[%s128_s30] sm:$0x1]  ;;  %s117_s19 = scalar_lea.vmem %s945_s2, %s507_s22 }
  0x30   :  { %592 = vmatprep.subr.bf16.mxu1 %v669_v1  ;;  %572 = vmatprep.subr.bf16.mxu0 %v669_v1  ;;  %130 = vst.msk [vmem:[#allocation2 + $0x7] sm:$0x1] %vm51_vm0, %v129_v30  ;;  %v118_v32 = vld [vmem:[%s117_s19] sm:$0x1] }
  0x31   :  { %119 = vst.msk [vmem:[#allocation2 + $0x6] sm:$0x1] %vm51_vm0, %v118_v32  ;;  %v534_v5 = vld [vmem:[%s952_s9] ss:$0 sm:$0xff] }
  0x33   :  { %593 = vmatpush3.bf16.msra.mxu1 %v629_v27  ;;  %573 = vmatpush3.bf16.msra.mxu0 %v630_v29 }
  0x34   :  { %594 = vmatprep.subr.bf16.mxu1 %v669_v1  ;;  %574 = vmatprep.subr.bf16.mxu0 %v669_v1 }
  0x37   :  { %595 = vmatpush3.bf16.msra.mxu1 %v631_v31  ;;  %575 = vmatpush3.bf16.msra.mxu0 %v632_v33 }
  0x38   :  { %600 = vmatprep.subr.bf16.mxu0 %v669_v1 }
  0x94   :  { %v80_v34 = vpop.permute.xlu1 %79  ;;  %v57_v35 = vpop.permute.xlu0 %56 }
  0x95   :  { %81 = vst.msk [vmem:[#allocation2 + $0x2] sm:$0x1] %vm58_vm2, %v80_v34  ;;  %59 = vst.msk [vmem:[#allocation2] sm:$0x1] %vm58_vm2, %v57_v35 }
  0x98   :  { %v91_v36 = vpop.permute.xlu1 %90  ;;  %v69_v37 = vpop.permute.xlu0 %68 }
  0x99   :  { %92 = vst.msk [vmem:[#allocation2 + $0x3] sm:$0x1] %vm58_vm2, %v91_v36  ;;  %70 = vst.msk [vmem:[#allocation2 + $0x1] sm:$0x1] %vm58_vm2, %v69_v37 }
  0x9c   :  { %v113_v38 = vpop.permute.xlu1 %112  ;;  %v102_v39 = vpop.permute.xlu0 %101 }
  0x9d   :  { %114 = vst.msk [vmem:[#allocation2 + $0x5] sm:$0x1] %vm58_vm2, %v113_v38  ;;  %103 = vst.msk [vmem:[#allocation2 + $0x4] sm:$0x1] %vm58_vm2, %v102_v39 }
  0xa0   :  { %v135_v40 = vpop.permute.xlu1 %134  ;;  %v124_v41 = vpop.permute.xlu0 %123 }
  0xa1   :  { %136 = vst.msk [vmem:[#allocation2 + $0x7] sm:$0x1] %vm58_vm2, %v135_v40  ;;  %125 = vst.msk [vmem:[#allocation2 + $0x6] sm:$0x1] %vm58_vm2, %v124_v41 }
  0xa8   :  { %v137_v42 = vld [vmem:[#allocation2] sm:$0xff] }
  0xa9   :  { %v138_v43 = vshll.u32 %v137_v42, 16  ;;  %v140_v44 = vshrl.u32 %v137_v42, 16 }
  0xab   :  { %v143_v45 = vpack.c.bf16 %v138_v43, %v138_v43  ;;  %v141_v46 = vshll.u32 %v140_v44, 16 }
  0xad   :  { %597 = vmatmul.mubr.bf16.vlgmr.msra.gmra.mxu1 %v143_v45  ;;  %v160_v48 = vpack.c.bf16 %v141_v46, %v141_v46 }
  0xaf   :  { %577 = vmatmul.mubr.bf16.vlgmr.msra.gmra.mxu0 %v160_v48 }
  0xb0   :  { %601 = vmatpush3.bf16.msra.mxu0 %v633_v47  ;;  %608 = vmatprep.mubr.msk.bf16.mxu0 %vm671_vm1, %v669_v1 }
  0xb1   :  { %602 = vmatprep.subr.bf16.mxu0 %v669_v1 }
  0xb4   :  { %603 = vmatpush3.bf16.msra.mxu0 %v634_v49 }
  0xb5   :  { %604 = vmatprep.subr.bf16.mxu0 %v669_v1 }
  0xb8   :  { %605 = vmatpush3.bf16.msra.mxu0 %v635_v50 }
  0xb9   :  { %606 = vmatprep.subr.bf16.mxu0 %v669_v1  ;;  %v528_v1 = vld [vmem:[%s951_s8] ss:$0 sm:$0xff] }
  0xbc   :  { %607 = vmatpush3.bf16.msra.mxu0 %v636_v51 }
 0x16d   :  { %v347_v52 = vpop.f32.mrf.mxu1 }
 0x16f   :  { %v259_v53 = vpop.f32.mrf.mxu0  ;;  %v598_v55 = vpop.f32.mrf.mxu1 }
 0x170   :  { %v348_v56 = vadd.f32 %v347_v52, %v259_v53 }
 0x171   :  { %v578_v57 = vpop.f32.mrf.mxu0  ;;  %v350_v58 = vpop.f32.mrf.mxu1 }
 0x172   :  { %v360_v59 = vadd.f32 %v527_v54, %v348_v56 }
 0x173   :  { %v262_v60 = vpop.f32.mrf.mxu0  ;;  %v599_v61 = vpop.f32.mrf.mxu1 }
 0x174   :  { %v361_v62 = vmax.f32 %v360_v59, 0.0 }
 0x175   :  { %v579_v63 = vpop.f32.mrf.mxu0 }
 0x176   :  { %v362_v0 = vpack.c.bf16 %v361_v62, %v361_v62 }
 0x178   :  { %609 = vmatmul.mubr.msk.bf16.vlgmr.msra.gmra.mxu0 %vm402_vm3, %v362_v0 }
 0x238   :  { %v440_v2 = vpop.f32.mrf.mxu0 }
 0x239   :  { %v441_v3 = vadd.f32 %v528_v1, %v440_v2 }
 0x23a   :  { %v610_v4 = vpop.f32.mrf.mxu0 }
 0x23b   :  { %v446_v6 = vmax.f32 %v441_v3, 0.0 }
 0x23c   :  { %v443_v7 = vpop.f32.mrf.mxu0 }
 0x23d   :  { %v454_v8 = vmul.f32 %v534_v5, %v446_v6 }
 0x23e   :  { %v611_v9 = vpop.f32.mrf.mxu0 }
 0x23f   :  { %v456_v10 = vsel %vm455_vm4, %v454_v8, 0.0 }
 0x240   :  { %457 = vadd.xlane.f32.xlu0 %v456_v10 }
 0x2c9   :  { %v458_v12 = vpop.xlane.xlu0 %457 }
 0x2ca   :  { %v466_v13 = vadd.f32 %v535_v11, %v458_v12 }
 0x2cc   :  { %v536_v14 = vmul.f32 -1.442695, %v466_v13 }
 0x2ce   :  { %637 = vpow2.f32 %v536_v14 }
 0x2db   :  { %v638_v15 = vpop.eup %637 }
 0x2dc   :  { %v470_v16 = vadd.f32 1.0, %v638_v15 }
 0x2de   :  { %639 = vrcp.f32 %v470_v16 }
 0x2eb   :  { %v640_v17 = vpop.eup %639 }
 0x2ec   :  { %v473_v18 = vmul.f32 4.0, %v640_v17 }
 0x2ee   :  { %v474_v19 = vadd.f32 1.0, %v473_v18 }
 0x2f0   :  { %476 = vst.msk [vmem:[%s953_s11] sm:$0xff] %vm475_vm5, %v474_v19 }

// kernel: tpu_custom_call.1
= control target key start
LH: loop header
LB: loop body
LE: loop exit
PB: predicated region body
PF: predicated region fallthrough
CT: control target
= control target key end

     0   :  { %s944_s0 = inlined_call_operand.vmem [shape: s32[8], index: 0, kind: input, shape index: {}]   ;;  %s945_s2 = inlined_call_operand.vmem [shape: u32[16,64], index: 2, kind: input, shape index: {}]   ;;  %s946_s3 = inlined_call_operand.vmem [shape: u32[24,64], index: 3, kind: input, shape index: {}]   ;;  %s947_s4 = inlined_call_operand.vmem [shape: bf16[128,64], index: 4, kind: input, shape index: {}]   ;;  %s948_s5 = inlined_call_operand.vmem [shape: bf16[128,64], index: 5, kind: input, shape index: {}]   ;;  %s949_s6 = inlined_call_operand.vmem [shape: f32[1,64], index: 6, kind: input, shape index: {}]   ;;  %s950_s7 = inlined_call_operand.vmem [shape: bf16[64,32], index: 7, kind: input, shape index: {}]   ;;  %s951_s8 = inlined_call_operand.vmem [shape: f32[1,32], index: 8, kind: input, shape index: {}]   ;;  %s952_s9 = inlined_call_operand.vmem [shape: f32[1,32], index: 9, kind: input, shape index: {}]   ;;  %s953_s11 = inlined_call_operand.vmem [shape: f32[8,1], index: 11, kind: output, shape index: {}]   ;;  %s954_s1 = inlined_call_operand.vmem [shape: s32[8], index: 1, kind: input, shape index: {}]   ;;  %s955_s10 = inlined_call_operand.<no memory space> [shape: f32[1,1], index: 10, kind: input, shape index: {}]  }
   0x1   :  { %s16_s19 = sshll.u32 %s944_s0, 4  ;;  %s20_s22 = sshll.u32 %s954_s1, 4  ;;  %v24_v0 = vstv %s955_s10  ;;  %s17_s19 = int_to_ptr.vmem [resolvable:$true] %s16_s19  ;;  %s21_s22 = int_to_ptr.vmem [resolvable:$true] %s20_s22 }
   0x2   :  { %25 = vst [vmem:[#allocation6] sm:$0x1] %v24_v0  ;;  %s641_s25 = scalar_lea.vmem %s17_s19, 16  ;;  %p646_p1 = scmp.lt.s32.totalorder %s17_s19, %s17_s19 }
   0x3   :  { %p642_p0 = scmp.ne.s32.totalorder %s17_s19, %s641_s25  ;;  %p647_p2 = scmp.lt.s32.totalorder %s641_s25, %s641_s25 }
   0x5   :  { %p648_p3 = por %p647_p2, %p646_p1 }
   0x7   :  { %p649_p4 = pnand %p648_p3, %p642_p0 }
   0x9   :  { %652 = shalt.err (!%p649_p4)  }
   0xa   :  { %s667_s26 = smov [#allocation4]   ;;  %s653_s0 = scalar_lea.vmem %s21_s22, 16 }
   0xb   :  { %19 = dma.vmem_to_smem %s17_s19, 16, %s667_s26, [#allocation3] }
   0xc   :  { %p654_p5 = scmp.ne.s32.totalorder %s21_s22, %s653_s0  ;;  %p658_p6 = scmp.lt.s32.totalorder %s21_s22, %s21_s22 }
   0xd   :  { %p659_p7 = scmp.lt.s32.totalorder %s653_s0, %s653_s0 }
   0xf   :  { %p660_p8 = por %p659_p7, %p658_p6 }
  0x11   :  { %p661_p9 = pnand %p660_p8, %p654_p5 }
  0x13   :  { %664 = shalt.err (!%p661_p9)  }
  0x14   :  { %s668_s1 = smov [#allocation5]  }
  0x15   :  { %23 = dma.vmem_to_smem %s21_s22, 16, %s668_s1, [#allocation3] }
  0x16   :  { %665 = dma.done.wait [#allocation3], 32 }
  0x17   :  { %666 = vsyncadd [#allocation3], 4294967264 }
  0x18   :  { %27 = sfence }
  0x19   :  { %s500_s10 = sld [smem:[#allocation5 + $0x2]]  ;;  %v669_v1 = vmov 0.0   ;;  %v617_v2 = vld [vmem:[%s947_s4 + $0x38] sm:$0xff]   ;;  %v619_v4 = vld [vmem:[%s947_s4 + $0x30] sm:$0xff]   ;;  %v621_v7 = vld [vmem:[%s947_s4 + $0x28] sm:$0xff]   ;;  %vm51_vm0 = vcmask 516096  }
  0x1a   :  { %s53_s27 = sld [smem:[#allocation5]]  ;;  %580 = vmatprep.subr.bf16.mxu1 %v669_v1  ;;  %560 = vmatprep.subr.bf16.mxu0 %v669_v1  ;;  %v618_v3 = vld [vmem:[%s948_s5 + $0x38] sm:$0xff]   ;;  %v620_v5 = vld [vmem:[%s948_s5 + $0x30] sm:$0xff]   ;;  %v622_v8 = vld [vmem:[%s948_s5 + $0x28] sm:$0xff]   ;;  %vm671_vm1 = vmmov 0   ;;  %vm58_vm2 = vcmask 1040896  }
  0x1b   :  { %s502_s13 = sld [smem:[#allocation5 + $0x3]]  ;;  %581 = vmatpush3.bf16.msra.mxu1 %v617_v2  ;;  %561 = vmatpush3.bf16.msra.mxu0 %v618_v3  ;;  %v623_v12 = vld [vmem:[%s947_s4 + $0x20] sm:$0xff]   ;;  %v625_v20 = vld [vmem:[%s947_s4 + $0x18] sm:$0xff]   ;;  %v627_v24 = vld [vmem:[%s947_s4 + $0x10] sm:$0xff]   ;;  %vm402_vm3 = vcmask 523264   ;;  %vm455_vm4 = vcmask 261120  }
  0x1c   :  { %s749_s14 = sld [smem:[#allocation5 + $0x1]]  ;;  %582 = vmatprep.subr.bf16.mxu1 %v669_v1  ;;  %562 = vmatprep.subr.bf16.mxu0 %v669_v1  ;;  %v624_v14 = vld [vmem:[%s948_s5 + $0x20] sm:$0xff]   ;;  %v626_v22 = vld [vmem:[%s948_s5 + $0x18] sm:$0xff]   ;;  %v628_v25 = vld [vmem:[%s948_s5 + $0x10] sm:$0xff]   ;;  %vm475_vm5 = vcmask 7168  }
  0x1d   :  { %s751_s15 = sld [smem:[#allocation5 + $0x5]]  ;;  %596 = vmatprep.mubr.msk.bf16.mxu1 %vm671_vm1, %v669_v1  ;;  %576 = vmatprep.mubr.msk.bf16.mxu0 %vm671_vm1, %v669_v1  ;;  %v629_v27 = vld [vmem:[%s947_s4 + $0x8] sm:$0xff]   ;;  %v631_v31 = vld [vmem:[%s947_s4] sm:$0xff]   ;;  %v633_v47 = vld [vmem:[%s950_s7 + $0x18] sm:$0xff]  }
  0x1e   :  { %s761_s20 = sld [smem:[#allocation5 + $0x4]]  ;;  %v630_v29 = vld [vmem:[%s948_s5 + $0x8] sm:$0xff]   ;;  %v632_v33 = vld [vmem:[%s948_s5] sm:$0xff]   ;;  %v634_v49 = vld [vmem:[%s950_s7 + $0x10] sm:$0xff]  }
  0x1f   :  { %s77_s23 = scalar_lea.vmem %s946_s3, %s500_s10  ;;  %s766_s24 = sld [smem:[#allocation5 + $0x7]]  ;;  %583 = vmatpush3.bf16.msra.mxu1 %v619_v4  ;;  %563 = vmatpush3.bf16.msra.mxu0 %v620_v5  ;;  %v635_v50 = vld [vmem:[%s950_s7 + $0x8] sm:$0xff]   ;;  %v636_v51 = vld [vmem:[%s950_s7] sm:$0xff]  }
  0x20   :  { %v78_v6 = vld [vmem:[%s77_s23] sm:$0x1]  ;;  %s54_s0 = scalar_lea.vmem %s946_s3, %s53_s27  ;;  %s771_s1 = sld [smem:[#allocation5 + $0x6]]  ;;  %584 = vmatprep.subr.bf16.mxu1 %v669_v1  ;;  %564 = vmatprep.subr.bf16.mxu0 %v669_v1 }
  0x21   :  { %s670_s10 = smov 64   ;;  %v55_v9 = vld [vmem:[%s54_s0] sm:$0x1]  ;;  %s88_s17 = scalar_lea.vmem %s946_s3, %s502_s13 }
  0x22   :  { %79 = vrot.lane.b32.xlu1 %v78_v6, %s670_s10  ;;  %s783_s18 = sld [smem:[#allocation4 + $0x2]]  ;;  %56 = vrot.lane.b32.xlu0 %v55_v9, %s670_s10  ;;  %v89_v10 = vld [vmem:[%s88_s17] sm:$0x1]  ;;  %s66_s22 = scalar_lea.vmem %s946_s3, %s749_s14 }
  0x23   :  { %s791_s23 = sld [smem:[#allocation4]]  ;;  %v67_v11 = vld [vmem:[%s66_s22] sm:$0x1]  ;;  %s110_s26 = scalar_lea.vmem %s946_s3, %s751_s15  ;;  %585 = vmatpush3.bf16.msra.mxu1 %v621_v7  ;;  %565 = vmatpush3.bf16.msra.mxu0 %v622_v8 }
  0x24   :  { %s798_s0 = sld [smem:[#allocation4 + $0x3]]  ;;  %s99_s30 = scalar_lea.vmem %s946_s3, %s761_s20  ;;  %586 = vmatprep.subr.bf16.mxu1 %v669_v1  ;;  %v111_v13 = vld [vmem:[%s110_s26] sm:$0x1]  ;;  %566 = vmatprep.subr.bf16.mxu0 %v669_v1 }
  0x25   :  { %s804_s14 = sld [smem:[#allocation4 + $0x1]]  ;;  %s132_s27 = scalar_lea.vmem %s946_s3, %s766_s24  ;;  %v100_v15 = vld [vmem:[%s99_s30] sm:$0x1] }
  0x26   :  { %90 = vrot.lane.b32.xlu1 %v89_v10, %s670_s10  ;;  %68 = vrot.lane.b32.xlu0 %v67_v11, %s670_s10  ;;  %s121_s21 = scalar_lea.vmem %s946_s3, %s771_s1  ;;  %s828_s29 = sld [smem:[#allocation4 + $0x5]]  ;;  %v133_v16 = vld [vmem:[%s132_s27] sm:$0x1]  ;;  %v535_v11 = vld [vmem:[#allocation6] ss:$0 sm:$0xff] }
  0x27   :  { %587 = vmatpush3.bf16.msra.mxu1 %v623_v12  ;;  %567 = vmatpush3.bf16.msra.mxu0 %v624_v14  ;;  %s838_s30 = sld [smem:[#allocation4 + $0x4]]  ;;  %v122_v18 = vld [vmem:[%s121_s21] sm:$0x1] }
  0x28   :  { %s73_s28 = scalar_lea.vmem %s945_s2, %s783_s18  ;;  %588 = vmatprep.subr.bf16.mxu1 %v669_v1  ;;  %568 = vmatprep.subr.bf16.mxu0 %v669_v1  ;;  %s509_s21 = sld [smem:[#allocation4 + $0x7]]  ;;  %v527_v54 = vld [vmem:[%s949_s6] ss:$0 sm:$0xff] }
  0x29   :  { %v74_v17 = vld [vmem:[%s73_s28] sm:$0x1]  ;;  %s49_s26 = scalar_lea.vmem %s945_s2, %s791_s23  ;;  %s507_s22 = sld [smem:[#allocation4 + $0x6]] }
  0x2a   :  { %112 = vrot.lane.b32.xlu1 %v111_v13, %s670_s10  ;;  %75 = vst.msk [vmem:[#allocation2 + $0x2] sm:$0x1] %vm51_vm0, %v74_v17  ;;  %v50_v19 = vld [vmem:[%s49_s26] sm:$0x1]  ;;  %s84_s16 = scalar_lea.vmem %s945_s2, %s798_s0  ;;  %101 = vrot.lane.b32.xlu0 %v100_v15, %s670_s10 }
  0x2b   :  { %52 = vst.msk [vmem:[#allocation2] sm:$0x1] %vm51_vm0, %v50_v19  ;;  %v85_v21 = vld [vmem:[%s84_s16] sm:$0x1]  ;;  %s62_s20 = scalar_lea.vmem %s945_s2, %s804_s14  ;;  %589 = vmatpush3.bf16.msra.mxu1 %v625_v20  ;;  %569 = vmatpush3.bf16.msra.mxu0 %v626_v22 }
  0x2c   :  { %86 = vst.msk [vmem:[#allocation2 + $0x3] sm:$0x1] %vm51_vm0, %v85_v21  ;;  %v63_v23 = vld [vmem:[%s62_s20] sm:$0x1]  ;;  %s106_s1 = scalar_lea.vmem %s945_s2, %s828_s29  ;;  %590 = vmatprep.subr.bf16.mxu1 %v669_v1  ;;  %570 = vmatprep.subr.bf16.mxu0 %v669_v1 }
  0x2d   :  { %64 = vst.msk [vmem:[#allocation2 + $0x1] sm:$0x1] %vm51_vm0, %v63_v23  ;;  %v107_v26 = vld [vmem:[%s106_s1] sm:$0x1]  ;;  %s95_s12 = scalar_lea.vmem %s945_s2, %s838_s30 }
  0x2e   :  { %134 = vrot.lane.b32.xlu1 %v133_v16, %s670_s10  ;;  %123 = vrot.lane.b32.xlu0 %v122_v18, %s670_s10  ;;  %108 = vst.msk [vmem:[#allocation2 + $0x5] sm:$0x1] %vm51_vm0, %v107_v26  ;;  %v96_v28 = vld [vmem:[%s95_s12] sm:$0x1]  ;;  %s128_s30 = scalar_lea.vmem %s945_s2, %s509_s21 }
  0x2f   :  { %97 = vst.msk [vmem:[#allocation2 + $0x4] sm:$0x1] %vm51_vm0, %v96_v28  ;;  %591 = vmatpush3.bf16.msra.mxu1 %v627_v24  ;;  %571 = vmatpush3.bf16.msra.mxu0 %v628_v25  ;;  %v129_v30 = vld [vmem:[%s128_s30] sm:$0x1]  ;;  %s117_s19 = scalar_lea.vmem %s945_s2, %s507_s22 }
  0x30   :  { %592 = vmatprep.subr.bf16.mxu1 %v669_v1  ;;  %572 = vmatprep.subr.bf16.mxu0 %v669_v1  ;;  %130 = vst.msk [vmem:[#allocation2 + $0x7] sm:$0x1] %vm51_vm0, %v129_v30  ;;  %v118_v32 = vld [vmem:[%s117_s19] sm:$0x1] }
  0x31   :  { %119 = vst.msk [vmem:[#allocation2 + $0x6] sm:$0x1] %vm51_vm0, %v118_v32  ;;  %v534_v5 = vld [vmem:[%s952_s9] ss:$0 sm:$0xff] }
  0x33   :  { %593 = vmatpush3.bf16.msra.mxu1 %v629_v27  ;;  %573 = vmatpush3.bf16.msra.mxu0 %v630_v29 }
  0x34   :  { %594 = vmatprep.subr.bf16.mxu1 %v669_v1  ;;  %574 = vmatprep.subr.bf16.mxu0 %v669_v1 }
  0x37   :  { %595 = vmatpush3.bf16.msra.mxu1 %v631_v31  ;;  %575 = vmatpush3.bf16.msra.mxu0 %v632_v33 }
  0x38   :  { %600 = vmatprep.subr.bf16.mxu0 %v669_v1 }
  0x94   :  { %v80_v34 = vpop.permute.xlu1 %79  ;;  %v57_v35 = vpop.permute.xlu0 %56 }
  0x95   :  { %81 = vst.msk [vmem:[#allocation2 + $0x2] sm:$0x1] %vm58_vm2, %v80_v34  ;;  %59 = vst.msk [vmem:[#allocation2] sm:$0x1] %vm58_vm2, %v57_v35 }
  0x98   :  { %v91_v36 = vpop.permute.xlu1 %90  ;;  %v69_v37 = vpop.permute.xlu0 %68 }
  0x99   :  { %92 = vst.msk [vmem:[#allocation2 + $0x3] sm:$0x1] %vm58_vm2, %v91_v36  ;;  %70 = vst.msk [vmem:[#allocation2 + $0x1] sm:$0x1] %vm58_vm2, %v69_v37 }
  0x9c   :  { %v113_v38 = vpop.permute.xlu1 %112  ;;  %v102_v39 = vpop.permute.xlu0 %101 }
  0x9d   :  { %114 = vst.msk [vmem:[#allocation2 + $0x5] sm:$0x1] %vm58_vm2, %v113_v38  ;;  %103 = vst.msk [vmem:[#allocation2 + $0x4] sm:$0x1] %vm58_vm2, %v102_v39 }
  0xa0   :  { %v135_v40 = vpop.permute.xlu1 %134  ;;  %v124_v41 = vpop.permute.xlu0 %123 }
  0xa1   :  { %136 = vst.msk [vmem:[#allocation2 + $0x7] sm:$0x1] %vm58_vm2, %v135_v40  ;;  %125 = vst.msk [vmem:[#allocation2 + $0x6] sm:$0x1] %vm58_vm2, %v124_v41 }
  0xa8   :  { %v137_v42 = vld [vmem:[#allocation2] sm:$0xff] }
  0xa9   :  { %v138_v43 = vshll.u32 %v137_v42, 16  ;;  %v140_v44 = vshrl.u32 %v137_v42, 16 }
  0xab   :  { %v143_v45 = vpack.c.bf16 %v138_v43, %v138_v43  ;;  %v141_v46 = vshll.u32 %v140_v44, 16 }
  0xad   :  { %597 = vmatmul.mubr.bf16.vlgmr.msra.gmra.mxu1 %v143_v45  ;;  %v160_v48 = vpack.c.bf16 %v141_v46, %v141_v46 }
  0xaf   :  { %577 = vmatmul.mubr.bf16.vlgmr.msra.gmra.mxu0 %v160_v48 }
  0xb0   :  { %601 = vmatpush3.bf16.msra.mxu0 %v633_v47  ;;  %608 = vmatprep.mubr.msk.bf16.mxu0 %vm671_vm1, %v669_v1 }
  0xb1   :  { %602 = vmatprep.subr.bf16.mxu0 %v669_v1 }
  0xb4   :  { %603 = vmatpush3.bf16.msra.mxu0 %v634_v49 }
  0xb5   :  { %604 = vmatprep.subr.bf16.mxu0 %v669_v1 }
  0xb8   :  { %605 = vmatpush3.bf16.msra.mxu0 %v635_v50 }
  0xb9   :  { %606 = vmatprep.subr.bf16.mxu0 %v669_v1  ;;  %v528_v1 = vld [vmem:[%s951_s8] ss:$0 sm:$0xff] }
  0xbc   :  { %607 = vmatpush3.bf16.msra.mxu0 %v636_v51 }
 0x16d   :  { %v347_v52 = vpop.f32.mrf.mxu1 }
 0x16f   :  { %v259_v53 = vpop.f32.mrf.mxu0  ;;  %v598_v55 = vpop.f32.mrf.mxu1 }
 0x170   :  { %v348_v56 = vadd.f32 %v347_v52, %v259_v53 }
 0x171   :  { %v578_v57 = vpop.f32.mrf.mxu0  ;;  %v350_v58 = vpop.f32.mrf.mxu1 }
 0x172   :  { %v360_v59 = vadd.f32 %v527_v54, %v348_v56 }
 0x173   :  { %v262_v60 = vpop.f32.mrf.mxu0  ;;  %v599_v61 = vpop.f32.mrf.mxu1 }
 0x174   :  { %v361_v62 = vmax.f32 %v360_v59, 0.0 }
 0x175   :  { %v579_v63 = vpop.f32.mrf.mxu0 }
 0x176   :  { %v362_v0 = vpack.c.bf16 %v361_v62, %v361_v62 }
 0x178   :  { %609 = vmatmul.mubr.msk.bf16.vlgmr.msra.gmra.mxu0 %vm402_vm3, %v362_v0 }
 0x238   :  { %v440_v2 = vpop.f32.mrf.mxu0 }
 0x239   :  { %v441_v3 = vadd.f32 %v528_v1, %v440_v2 }
 0x23a   :  { %v610_v4 = vpop.f32.mrf.mxu0 }
 0x23b   :  { %v446_v6 = vmax.f32 %v441_v3, 0.0 }
 0x23c   :  { %v443_v7 = vpop.f32.mrf.mxu0 }
 0x23d   :  { %v454_v8 = vmul.f32 %v534_v5, %v446_v6 }
 0x23e   :  { %v611_v9 = vpop.f32.mrf.mxu0 }
 0x23f   :  { %v456_v10 = vsel %vm455_vm4, %v454_v8, 0.0 }
 0x240   :  { %457 = vadd.xlane.f32.xlu0 %v456_v10 }
 0x2c9   :  { %v458_v12 = vpop.xlane.xlu0 %457 }
 0x2ca   :  { %v466_v13 = vadd.f32 %v535_v11, %v458_v12 }
 0x2cc   :  { %v536_v14 = vmul.f32 -1.442695, %v466_v13 }
 0x2ce   :  { %637 = vpow2.f32 %v536_v14 }
 0x2db   :  { %v638_v15 = vpop.eup %637 }
 0x2dc   :  { %v470_v16 = vadd.f32 1.0, %v638_v15 }
 0x2de   :  { %639 = vrcp.f32 %v470_v16 }
 0x2eb   :  { %v640_v17 = vpop.eup %639 }
 0x2ec   :  { %v473_v18 = vmul.f32 4.0, %v640_v17 }
 0x2ee   :  { %v474_v19 = vadd.f32 1.0, %v473_v18 }
 0x2f0   :  { %476 = vst.msk [vmem:[%s953_s11] sm:$0xff] %vm475_vm5, %v474_v19 }

</bundles_post_ra>
